<compile_context>
chip_gen: v5e
topology: v5e:2x2
jax: 0.10.0
libtpu: 0.0.40
codegen_flags: <defaults>
</compile_context>

<pallas_src>
from functools import partial

import jax
import jax.numpy as jnp
from jax.experimental import pallas as pl
from jax.experimental.pallas import tpu as pltpu

_EPS = 1e-5        # nn.BatchNorm2d default
_LANE = 128


def _round_up(x, m):
    return (x + m - 1) // m * m


def _pad2d(a, rows, cols):
    return jnp.pad(a, ((0, rows - a.shape[0]), (0, cols - a.shape[1])))


def _tpu_budget():
    """Generation-aware (vmem_limit_bytes, max_row_tile)."""
    cap = None
    try:
        cap = getattr(pltpu.get_tpu_info(), "vmem_capacity_bytes", None)
    except Exception:
        cap = None
    if cap is None:
        cap = 64 * 1024 * 1024                      # conservative (v7x-like)
    # leave headroom below physical VMEM, never exceed ~96 MiB
    vmem_limit = int(min(max(cap - 16 * 1024 * 1024, 32 * 1024 * 1024),
                         96 * 1024 * 1024))
    max_tile = 1024 if cap >= 100 * 1024 * 1024 else 512   # v5e/v6e vs v7x
    return vmem_limit, max_tile


def _pick_tile_m(m_true, max_tile, k, c, vmem_budget):
    """Row-tile size that fits the VMEM budget and leaves >= 2 grid steps."""
    tm = min(max_tile, _round_up(m_true, 8))

    def need(t):
        # 2x double-buffered bf16 row tile + 2x bf16 weight + 2x bf16 output
        # tile + f32 matmul result + stats (with slack).
        return (2 * t * k + 2 * k * c + 2 * t * c) * 2 + t * c * 4 + 8 * c * 4

    while tm > 8 and need(tm) > vmem_budget:
        tm = _round_up(max(tm // 2, 8), 8)
    # v7x shards the "parallel" M grid across both TensorCores; make sure
    # there are at least two tiles so neither core idles.
    while tm > 8 and pl.cdiv(m_true, tm) < 2:
        tm = _round_up(max(tm // 2, 8), 8)
    return max(tm, 8)


# ----------------------------- Pallas kernels ------------------------------ #

def _matmul_stats_kernel(x_ref, w_ref, y_ref, st_ref):
    # x: (TM, K) bf16, w: (K, C) bf16 -> y: (TM, C) bf16, st: (2, C) f32
    # (Zero-padded input rows / channels contribute exactly zero to the stats.)
    y = jnp.dot(x_ref[...], w_ref[...], preferred_element_type=jnp.float32)
    y_ref[...] = y.astype(y_ref.dtype)
    st_ref[0:1, :] = jnp.sum(y, axis=0, keepdims=True)
    st_ref[1:2, :] = jnp.sum(y * y, axis=0, keepdims=True)


def _affine_relu_matmul_stats_kernel(x_ref, sc_ref, sh_ref, w_ref, y_ref, st_ref,
                                     *, m_true, tile_m):
    # Fused pass-2 of the previous BN (scale/shift + ReLU) with this conv's
    # matmul + per-tile partial statistics.  Padded rows would see
    # relu(shift) != 0, so they are masked -- but only the last tile pays.
    xa = x_ref[...].astype(jnp.float32) * sc_ref[...] + sh_ref[...]
    xa = jnp.maximum(xa, 0.0).astype(w_ref.dtype)
    y = jnp.dot(xa, w_ref[...], preferred_element_type=jnp.float32)

    def emit(yv):
        y_ref[...] = yv.astype(y_ref.dtype)
        st_ref[0:1, :] = jnp.sum(yv, axis=0, keepdims=True)
        st_ref[1:2, :] = jnp.sum(yv * yv, axis=0, keepdims=True)

    if m_true % tile_m:                                   # static: padding exists
        last = pl.program_id(0) == pl.num_programs(0) - 1

        @pl.when(last)
        def _():
            row = (pl.program_id(0) * tile_m
                   + jax.lax.broadcasted_iota(jnp.int32, (tile_m, 1), 0))
            emit(jnp.where(row < m_true, y, 0.0))

        @pl.when(jnp.logical_not(last))
        def _():
            emit(y)
    else:
        emit(y)


def _affine_add_relu_kernel(y_ref, sc_ref, sh_ref, r_ref, rsc_ref, rsh_ref, o_ref):
    # Final epilogue: BN3 affine + (downsample-BN | identity) residual + ReLU.
    y = y_ref[...].astype(jnp.float32) * sc_ref[...] + sh_ref[...]
    r = r_ref[...].astype(jnp.float32) * rsc_ref[...] + rsh_ref[...]
    o_ref[...] = jnp.maximum(y + r, 0.0).astype(o_ref.dtype)


# --------------------------- pallas_call wrappers --------------------------- #

def _conv1x1_bn_stats(x2d, w2d, *, tile_m, cparams):
    Mp, K = x2d.shape
    C = w2d.shape[1]
    gm = Mp // tile_m
    return pl.pallas_call(
        _matmul_stats_kernel,
        grid=(gm,),
        in_specs=[
            pl.BlockSpec((tile_m, K), lambda m: (m, 0)),
            # constant index_map: the weight tile stays VMEM-resident.
            # TODO(synk): pipeline_mode=pl.Buffered(1) to single-buffer it on v7x.
            pl.BlockSpec((K, C), lambda m: (0, 0)),
        ],
        out_specs=[
            pl.BlockSpec((tile_m, C), lambda m: (m, 0)),
            pl.BlockSpec((None, 2, C), lambda m: (m, 0, 0)),
        ],
        out_shape=(
            jax.ShapeDtypeStruct((Mp, C), jnp.bfloat16),
            jax.ShapeDtypeStruct((gm, 2, C), jnp.float32),
        ),
        compiler_params=cparams,
    )(x2d, w2d)


def _affine_relu_conv_bn_stats(x2d, scale, shift, w2d, *, m_true, tile_m, cparams):
    Mp, K = x2d.shape
    C = w2d.shape[1]
    gm = Mp // tile_m
    kern = partial(_affine_relu_matmul_stats_kernel, m_true=m_true, tile_m=tile_m)
    return pl.pallas_call(
        kern,
        grid=(gm,),
        in_specs=[
            pl.BlockSpec((tile_m, K), lambda m: (m, 0)),
            pl.BlockSpec((1, K), lambda m: (0, 0)),
            pl.BlockSpec((1, K), lambda m: (0, 0)),
            pl.BlockSpec((K, C), lambda m: (0, 0)),
        ],
        out_specs=[
            pl.BlockSpec((tile_m, C), lambda m: (m, 0)),
            pl.BlockSpec((None, 2, C), lambda m: (m, 0, 0)),
        ],
        out_shape=(
            jax.ShapeDtypeStruct((Mp, C), jnp.bfloat16),
            jax.ShapeDtypeStruct((gm, 2, C), jnp.float32),
        ),
        compiler_params=cparams,
    )(x2d, scale, shift, w2d)


def _affine_add_relu(y2d, scale, shift, res2d, rscale, rshift, *, tile_m, cparams):
    Mp, C = y2d.shape
    gm = Mp // tile_m
    return pl.pallas_call(
        _affine_add_relu_kernel,
        grid=(gm,),
        in_specs=[
            pl.BlockSpec((tile_m, C), lambda m: (m, 0)),
            pl.BlockSpec((1, C), lambda m: (0, 0)),
            pl.BlockSpec((1, C), lambda m: (0, 0)),
            pl.BlockSpec((tile_m, C), lambda m: (m, 0)),
            pl.BlockSpec((1, C), lambda m: (0, 0)),
            pl.BlockSpec((1, C), lambda m: (0, 0)),
        ],
        out_specs=pl.BlockSpec((tile_m, C), lambda m: (m, 0)),
        out_shape=jax.ShapeDtypeStruct((Mp, C), jnp.bfloat16),   # bf16: mem-bound
        compiler_params=cparams,
    )(y2d, scale, shift, res2d, rscale, rshift)


# ------------------------------- JAX glue ---------------------------------- #

def _bn_scale_shift(stats, m_true, gamma, beta, eps=_EPS):
    """Reduce per-tile (sum, sumsq) partials to per-channel affine scale/shift."""
    s = jnp.sum(stats[:, 0, :], axis=0)
    q = jnp.sum(stats[:, 1, :], axis=0)
    mean = s / m_true
    var = jnp.maximum(q / m_true - mean * mean, 0.0)      # biased variance
    scale = gamma * jax.lax.rsqrt(var + eps)
    shift = beta - mean * scale
    return (scale.reshape(1, -1).astype(jnp.float32),
            shift.reshape(1, -1).astype(jnp.float32))


def _im2col_3x3(x_nhwc, stride):
    """3x3, padding=1 patch extraction -> (N*Ho*Wo, 9*C) (kept in input dtype)."""
    N, H, W, C = x_nhwc.shape
    Ho = (H - 1) // stride + 1
    Wo = (W - 1) // stride + 1
    xp = jnp.pad(x_nhwc, ((0, 0), (1, 1), (1, 1), (0, 0)))
    patches = []
    for kh in range(3):
        for kw in range(3):
            patches.append(
                xp[:, kh:kh + (Ho - 1) * stride + 1:stride,
                      kw:kw + (Wo - 1) * stride + 1:stride, :])
    xcol = jnp.stack(patches, axis=3)                       # (N,Ho,Wo,9,C), tap-major
    return xcol.reshape(N * Ho * Wo, 9 * C), Ho, Wo


@partial(jax.jit, static_argnames=("stride", "is_down_sampling", "expansion", "tile_m"))
def bottleneck_forward(x_nchw, p, *, stride, is_down_sampling, expansion=4, tile_m=None):
    """Pallas implementation of Bottleneck.forward (NCHW in, NCHW out)."""
    vmem_limit, max_tile = _tpu_budget()
    if tile_m is not None:
        max_tile = tile_m
    budget = int(vmem_limit * 0.8)
    cp = pltpu.CompilerParams(dimension_semantics=("parallel",),
                              vmem_limit_bytes=vmem_limit)

    # NCHW -> NHWC in bf16 (halves the bytes moved by the layout transpose).
    x = jnp.transpose(x_nchw.astype(jnp.bfloat16), (0, 2, 3, 1))
    N, H, W, Cin = x.shape
    places = p["w1"].shape[0]
    c_out = places * expansion

    Kpad = _round_up(Cin, _LANE)
    Ppad = _round_up(places, _LANE)
    Opad = _round_up(c_out, _LANE)

    Ho = (H - 1) // stride + 1
    Wo = (W - 1) // stride + 1
    M1 = N * H * W
    M2 = N * Ho * Wo

    tm1 = _pick_tile_m(M1, max_tile, Kpad, Ppad, budget)
    tm2 = _pick_tile_m(M2, max_tile, 9 * Ppad, max(Ppad, Opad), budget)
    M1p = _round_up(M1, tm1)
    M2p = _round_up(M2, tm2)

    # ---- pack & zero-pad weights / BN params (padding is exact: padded
    #      channels/rows stay identically zero through the whole pipeline) ----
    w1 = _pad2d(jnp.transpose(p["w1"].reshape(places, Cin)), Kpad, Ppad).astype(jnp.bfloat16)
    w2t = jnp.transpose(p["w2"], (2, 3, 1, 0))                     # (kh,kw,ci,co)
    w2t = jnp.pad(w2t, ((0, 0), (0, 0), (0, Ppad - places), (0, Ppad - places)))
    w2 = w2t.reshape(9 * Ppad, Ppad).astype(jnp.bfloat16)
    w3 = _pad2d(jnp.transpose(p["w3"].reshape(c_out, places)), Ppad, Opad).astype(jnp.bfloat16)
    g1 = jnp.pad(p["g1"], (0, Ppad - places)); b1 = jnp.pad(p["b1"], (0, Ppad - places))
    g2 = jnp.pad(p["g2"], (0, Ppad - places)); b2 = jnp.pad(p["b2"], (0, Ppad - places))
    g3 = jnp.pad(p["g3"], (0, Opad - c_out));  b3 = jnp.pad(p["b3"], (0, Opad - c_out))

    # ---- conv1: 1x1 matmul + partial BN stats ----
    x2d = _pad2d(x.reshape(M1, Cin), M1p, Kpad)                    # bf16
    y1_raw, st1 = _conv1x1_bn_stats(x2d, w1, tile_m=tm1, cparams=cp)
    s1, h1 = _bn_scale_shift(st1, M1, g1, b1)

    # ---- conv2: 3x3 stride=s ----
    # BN1 affine + ReLU is applied (in XLA, fused with the patch extraction)
    # BEFORE the spatial zero-padding, so boundary taps correctly see 0
    # post-activation (matches PyTorch); no 9x-replicated affine prologue.
    # TODO(synk): replace the im2col materialization with in-kernel 9-tap
    # accumulation (halo-windowed manual DMA) to cut conv2 input HBM traffic ~9x.
    y1_act = jnp.maximum(y1_raw[:M1].astype(jnp.float32) * s1 + h1, 0.0)
    y1_act = y1_act.astype(jnp.bfloat16).reshape(N, H, W, Ppad)
    xcol, _, _ = _im2col_3x3(y1_act, stride)                       # (M2, 9*Ppad) bf16
    xcol = jnp.pad(xcol, ((0, M2p - M2), (0, 0)))
    y2_raw, st2 = _conv1x1_bn_stats(xcol, w2, tile_m=tm2, cparams=cp)
    s2, h2 = _bn_scale_shift(st2, M2, g2, b2)

    # ---- conv3: 1x1 (BN2 + ReLU fused into the kernel prologue) ----
    y3_raw, st3 = _affine_relu_conv_bn_stats(y2_raw, s2, h2, w3,
                                             m_true=M2, tile_m=tm2, cparams=cp)
    s3, h3 = _bn_scale_shift(st3, M2, g3, b3)

    # ---- residual branch ----
    if is_down_sampling:
        wd = _pad2d(jnp.transpose(p["wd"].reshape(c_out, Cin)), Kpad, Opad).astype(jnp.bfloat16)
        gd = jnp.pad(p["gd"], (0, Opad - c_out)); bd = jnp.pad(p["bd"], (0, Opad - c_out))
        xd = _pad2d(x[:, ::stride, ::stride, :].reshape(M2, Cin), M2p, Kpad)   # bf16
        yd_raw, std_ = _conv1x1_bn_stats(xd, wd, tile_m=tm2, cparams=cp)
        rs, rh = _bn_scale_shift(std_, M2, gd, bd)
        res = yd_raw
    else:
        # identity shortcut (requires Cin == places*expansion and stride == 1);
        # reuse the bf16 conv1 input directly (no extra f32 copy).
        res = x2d if M1p == M2p else jnp.pad(x2d[:M2], ((0, M2p - M2), (0, 0)))
        rs = jnp.ones((1, Opad), jnp.float32)
        rh = jnp.zeros((1, Opad), jnp.float32)

    # ---- final: BN3 affine + residual affine + add + ReLU (fused epilogue) ----
    out = _affine_add_relu(y3_raw, s3, h3, res, rs, rh, tile_m=tm2, cparams=cp)
    out = out[:M2, :c_out].reshape(N, Ho, Wo, c_out)
    # transpose back to NCHW while still bf16, then cast to f32 at the end.
    return jnp.transpose(out, (0, 3, 1, 2)).astype(jnp.float32)


# ------------------------- pure-JAX reference (check) ----------------------- #

def _ref_forward(x, p, *, stride, is_down_sampling, expansion=4, eps=_EPS):
    def conv(x, w, s=1, pad=0):
        return jax.lax.conv_general_dilated(
            x, w, (s, s), [(pad, pad), (pad, pad)],
            dimension_numbers=("NCHW", "OIHW", "NCHW"))

    def bn(y, g, b):
        m = jnp.mean(y, axis=(0, 2, 3), keepdims=True)
        v = jnp.mean(jnp.square(y - m), axis=(0, 2, 3), keepdims=True)
        return (y - m) * jax.lax.rsqrt(v + eps) * g.reshape(1, -1, 1, 1) + b.reshape(1, -1, 1, 1)

    out = jax.nn.relu(bn(conv(x, p["w1"]), p["g1"], p["b1"]))
    out = jax.nn.relu(bn(conv(out, p["w2"], s=stride, pad=1), p["g2"], p["b2"]))
    out = bn(conv(out, p["w3"]), p["g3"], p["b3"])
    res = bn(conv(x, p["wd"], s=stride), p["gd"], p["bd"]) if is_down_sampling else x
    return jax.nn.relu(out + res)


# --------------------------------- setup ------------------------------------ #

def init_params(key, in_places, places, expansion, is_down_sampling):
    c_out = places * expansion
    ks = jax.random.split(key, 12)
    p = {
        "w1": 0.1 * jax.random.normal(ks[0], (places, in_places, 1, 1), jnp.float32),
        "g1": 1.0 + 0.1 * jax.random.normal(ks[1], (places,), jnp.float32),
        "b1": 0.1 * jax.random.normal(ks[2], (places,), jnp.float32),
        "w2": 0.1 * jax.random.normal(ks[3], (places, places, 3, 3), jnp.float32),
        "g2": 1.0 + 0.1 * jax.random.normal(ks[4], (places,), jnp.float32),
        "b2": 0.1 * jax.random.normal(ks[5], (places,), jnp.float32),
        "w3": 0.1 * jax.random.normal(ks[6], (c_out, places, 1, 1), jnp.float32),
        "g3": 1.0 + 0.1 * jax.random.normal(ks[7], (c_out,), jnp.float32),
        "b3": 0.1 * jax.random.normal(ks[8], (c_out,), jnp.float32),
    }
    if is_down_sampling:
        p["wd"] = 0.1 * jax.random.normal(ks[9], (c_out, in_places, 1, 1), jnp.float32)
        p["gd"] = 1.0 + 0.1 * jax.random.normal(ks[10], (c_out,), jnp.float32)
        p["bd"] = 0.1 * jax.random.normal(ks[11], (c_out,), jnp.float32)
    return p


if __name__ == "__main__":
    key = jax.random.PRNGKey(0)
    # bf16 MXU inputs / residual / output with f32 accumulation -> compare
    # against an f32 reference with correspondingly relaxed tolerances.
    TOL = dict(rtol=3e-2, atol=3e-2)

    # Case 1: downsampling bottleneck (channel + spatial change), x: NCHW (2, 4, 16, 16)
    k_x1, k_p1, k_x2, k_p2 = jax.random.split(key, 4)
    x1 = jax.random.normal(k_x1, (2, 4, 16, 16), jnp.float32)
    p1 = init_params(k_p1, in_places=4, places=4, expansion=4, is_down_sampling=True)
    out1 = bottleneck_forward(x1, p1, stride=2, is_down_sampling=True, expansion=4)
    jax.block_until_ready(out1)
    ref1 = _ref_forward(x1, p1, stride=2, is_down_sampling=True, expansion=4)
    assert out1.shape == (2, 16, 8, 8), out1.shape
    assert jnp.allclose(out1, ref1, **TOL), float(jnp.max(jnp.abs(out1 - ref1)))

    # Case 2: identity bottleneck (in_places == places*expansion, stride=1)
    x2 = jax.random.normal(k_x2, (2, 16, 16, 16), jnp.float32)
    p2 = init_params(k_p2, in_places=16, places=4, expansion=4, is_down_sampling=False)
    out2 = bottleneck_forward(x2, p2, stride=1, is_down_sampling=False, expansion=4)
    jax.block_until_ready(out2)
    ref2 = _ref_forward(x2, p2, stride=1, is_down_sampling=False, expansion=4)
    assert out2.shape == (2, 16, 16, 16), out2.shape
    assert jnp.allclose(out2, ref2, **TOL), float(jnp.max(jnp.abs(out2 - ref2)))

    print("KERNEL_OK")
</pallas_src>

<mosaic_0001>
module attributes {stable_mosaic.version = 11 : i64} {
  func.func @_matmul_stats_kernel(%arg0: i32, %arg1: memref<256x128xbf16, #tpu.memory_space<vmem>>, %arg2: memref<128x128xbf16, #tpu.memory_space<vmem>>, %arg3: memref<256x128xbf16, #tpu.memory_space<vmem>>, %arg4: memref<1x2x128xf32, #tpu.memory_space<vmem>>) attributes {dimension_semantics = [#tpu.dimension_semantics<parallel>], iteration_bounds = array<i64: 2>, scalar_prefetch = 0 : i64, scratch_operands = 0 : i64, tpu.core_type = #tpu.core_type<tc>, window_params = [{transform_indices = @transform_0, window_bounds = array<i64: 256, 128>}, {pipeline_mode = #tpu.pipeline_mode<synchronous>, transform_indices = @transform_1, window_bounds = array<i64: 128, 128>}, {transform_indices = @transform_2, window_bounds = array<i64: 256, 128>}, {transform_indices = @transform_3, window_bounds = array<i64: 1, 2, 128>}]} {
    %c0 = arith.constant 0 : index
    %c0_0 = arith.constant 0 : index
    %0 = vector.load %arg1[%c0, %c0_0] : memref<256x128xbf16, #tpu.memory_space<vmem>>, vector<256x128xbf16>
    %c0_1 = arith.constant 0 : index
    %c0_2 = arith.constant 0 : index
    %1 = vector.load %arg2[%c0_1, %c0_2] : memref<128x128xbf16, #tpu.memory_space<vmem>>, vector<128x128xbf16>
    %cst = arith.constant dense<0.000000e+00> : vector<256x128xf32>
    %2 = tpu.matmul %0, %1, %cst {dimension_numbers = #tpu.dot_dimension_numbers<[1], [0], [0], [1], [0, 0, 1, 1], [], []>} : vector<256x128xbf16>, vector<128x128xbf16>, vector<256x128xf32> -> vector<256x128xf32>
    %3 = arith.truncf %2 : vector<256x128xf32> to vector<256x128xbf16>
    %c0_3 = arith.constant 0 : index
    %c0_4 = arith.constant 0 : index
    %4 = vector.load %arg3[%c0_3, %c0_4] : memref<256x128xbf16, #tpu.memory_space<vmem>>, vector<256x128xbf16>
    tpu.vector_store %arg3[%c0_3, %c0_4], %3 {strides = array<i32>} : memref<256x128xbf16, #tpu.memory_space<vmem>>, vector<256x128xbf16>,
    %cst_5 = arith.constant dense<0.000000e+00> : vector<128xf32>
    %5 = vector.multi_reduction <add>, %2, %cst_5 [0] : vector<256x128xf32> to vector<128xf32>
    %6 = vector.shape_cast %5 : vector<128xf32> to vector<1x128xf32>
    %c0_6 = arith.constant 0 : index
    %c0_7 = arith.constant 0 : index
    %c0_8 = arith.constant 0 : index
    %7 = vector.load %arg4[%c0_6, %c0_7, %c0_8] : memref<1x2x128xf32, #tpu.memory_space<vmem>>, vector<1x1x128xf32>
    %8 = vector.shape_cast %7 : vector<1x1x128xf32> to vector<1x128xf32>
    %9 = vector.shape_cast %6 : vector<1x128xf32> to vector<1x1x128xf32>
    tpu.vector_store %arg4[%c0_6, %c0_7, %c0_8], %9 {strides = array<i32>} : memref<1x2x128xf32, #tpu.memory_space<vmem>>, vector<1x1x128xf32>,
    %10 = arith.mulf %2, %2 : vector<256x128xf32>
    %cst_9 = arith.constant dense<0.000000e+00> : vector<128xf32>
    %11 = vector.multi_reduction <add>, %10, %cst_9 [0] : vector<256x128xf32> to vector<128xf32>
    %12 = vector.shape_cast %11 : vector<128xf32> to vector<1x128xf32>
    %c0_10 = arith.constant 0 : index
    %c1 = arith.constant 1 : index
    %c0_11 = arith.constant 0 : index
    %13 = vector.load %arg4[%c0_10, %c1, %c0_11] : memref<1x2x128xf32, #tpu.memory_space<vmem>>, vector<1x1x128xf32>
    %14 = vector.shape_cast %13 : vector<1x1x128xf32> to vector<1x128xf32>
    %15 = vector.shape_cast %12 : vector<1x128xf32> to vector<1x1x128xf32>
    tpu.vector_store %arg4[%c0_10, %c1, %c0_11], %15 {strides = array<i32>} : memref<1x2x128xf32, #tpu.memory_space<vmem>>, vector<1x1x128xf32>,
    return
  }
  func.func @transform_0(%arg0: i32) -> (i32, i32) {
    %c0_i32 = arith.constant 0 : i32
    %c0_i32_0 = arith.constant 0 : i32
    return %arg0, %c0_i32 : i32, i32
  }
  func.func @transform_1(%arg0: i32) -> (i32, i32) {
    %c0_i32 = arith.constant 0 : i32
    %c0_i32_0 = arith.constant 0 : i32
    %c0_i32_1 = arith.constant 0 : i32
    return %c0_i32, %c0_i32_0 : i32, i32
  }
  func.func @transform_2(%arg0: i32) -> (i32, i32) {
    %c0_i32 = arith.constant 0 : i32
    %c0_i32_0 = arith.constant 0 : i32
    return %arg0, %c0_i32 : i32, i32
  }
  func.func @transform_3(%arg0: i32) -> (i32, i32, i32) {
    %c0_i32 = arith.constant 0 : i32
    %c0_i32_0 = arith.constant 0 : i32
    %c0_i32_1 = arith.constant 0 : i32
    return %arg0, %c0_i32, %c0_i32_0 : i32, i32, i32
  }
}

module attributes {stable_mosaic.version = 11 : i64} {
  func.func @_matmul_stats_kernel(%arg0: i32, %arg1: memref<64x1152xbf16, #tpu.memory_space<vmem>>, %arg2: memref<1152x128xbf16, #tpu.memory_space<vmem>>, %arg3: memref<64x128xbf16, #tpu.memory_space<vmem>>, %arg4: memref<1x2x128xf32, #tpu.memory_space<vmem>>) attributes {dimension_semantics = [#tpu.dimension_semantics<parallel>], iteration_bounds = array<i64: 2>, scalar_prefetch = 0 : i64, scratch_operands = 0 : i64, tpu.core_type = #tpu.core_type<tc>, window_params = [{transform_indices = @transform_0, window_bounds = array<i64: 64, 1152>}, {pipeline_mode = #tpu.pipeline_mode<synchronous>, transform_indices = @transform_1, window_bounds = array<i64: 1152, 128>}, {transform_indices = @transform_2, window_bounds = array<i64: 64, 128>}, {transform_indices = @transform_3, window_bounds = array<i64: 1, 2, 128>}]} {
    %c0 = arith.constant 0 : index
    %c0_0 = arith.constant 0 : index
    %0 = vector.load %arg1[%c0, %c0_0] : memref<64x1152xbf16, #tpu.memory_space<vmem>>, vector<64x1152xbf16>
    %c0_1 = arith.constant 0 : index
    %c0_2 = arith.constant 0 : index
    %1 = vector.load %arg2[%c0_1, %c0_2] : memref<1152x128xbf16, #tpu.memory_space<vmem>>, vector<1152x128xbf16>
    %cst = arith.constant dense<0.000000e+00> : vector<64x128xf32>
    %2 = tpu.matmul %0, %1, %cst {dimension_numbers = #tpu.dot_dimension_numbers<[1], [0], [0], [1], [0, 0, 1, 1], [], []>} : vector<64x1152xbf16>, vector<1152x128xbf16>, vector<64x128xf32> -> vector<64x128xf32>
    %3 = arith.truncf %2 : vector<64x128xf32> to vector<64x128xbf16>
    %c0_3 = arith.constant 0 : index
    %c0_4 = arith.constant 0 : index
    %4 = vector.load %arg3[%c0_3, %c0_4] : memref<64x128xbf16, #tpu.memory_space<vmem>>, vector<64x128xbf16>
    tpu.vector_store %arg3[%c0_3, %c0_4], %3 {strides = array<i32>} : memref<64x128xbf16, #tpu.memory_space<vmem>>, vector<64x128xbf16>,
    %cst_5 = arith.constant dense<0.000000e+00> : vector<128xf32>
    %5 = vector.multi_reduction <add>, %2, %cst_5 [0] : vector<64x128xf32> to vector<128xf32>
    %6 = vector.shape_cast %5 : vector<128xf32> to vector<1x128xf32>
    %c0_6 = arith.constant 0 : index
    %c0_7 = arith.constant 0 : index
    %c0_8 = arith.constant 0 : index
    %7 = vector.load %arg4[%c0_6, %c0_7, %c0_8] : memref<1x2x128xf32, #tpu.memory_space<vmem>>, vector<1x1x128xf32>
    %8 = vector.shape_cast %7 : vector<1x1x128xf32> to vector<1x128xf32>
    %9 = vector.shape_cast %6 : vector<1x128xf32> to vector<1x1x128xf32>
    tpu.vector_store %arg4[%c0_6, %c0_7, %c0_8], %9 {strides = array<i32>} : memref<1x2x128xf32, #tpu.memory_space<vmem>>, vector<1x1x128xf32>,
    %10 = arith.mulf %2, %2 : vector<64x128xf32>
    %cst_9 = arith.constant dense<0.000000e+00> : vector<128xf32>
    %11 = vector.multi_reduction <add>, %10, %cst_9 [0] : vector<64x128xf32> to vector<128xf32>
    %12 = vector.shape_cast %11 : vector<128xf32> to vector<1x128xf32>
    %c0_10 = arith.constant 0 : index
    %c1 = arith.constant 1 : index
    %c0_11 = arith.constant 0 : index
    %13 = vector.load %arg4[%c0_10, %c1, %c0_11] : memref<1x2x128xf32, #tpu.memory_space<vmem>>, vector<1x1x128xf32>
    %14 = vector.shape_cast %13 : vector<1x1x128xf32> to vector<1x128xf32>
    %15 = vector.shape_cast %12 : vector<1x128xf32> to vector<1x1x128xf32>
    tpu.vector_store %arg4[%c0_10, %c1, %c0_11], %15 {strides = array<i32>} : memref<1x2x128xf32, #tpu.memory_space<vmem>>, vector<1x1x128xf32>,
    return
  }
  func.func @transform_0(%arg0: i32) -> (i32, i32) {
    %c0_i32 = arith.constant 0 : i32
    %c0_i32_0 = arith.constant 0 : i32
    return %arg0, %c0_i32 : i32, i32
  }
  func.func @transform_1(%arg0: i32) -> (i32, i32) {
    %c0_i32 = arith.constant 0 : i32
    %c0_i32_0 = arith.constant 0 : i32
    %c0_i32_1 = arith.constant 0 : i32
    return %c0_i32, %c0_i32_0 : i32, i32
  }
  func.func @transform_2(%arg0: i32) -> (i32, i32) {
    %c0_i32 = arith.constant 0 : i32
    %c0_i32_0 = arith.constant 0 : i32
    return %arg0, %c0_i32 : i32, i32
  }
  func.func @transform_3(%arg0: i32) -> (i32, i32, i32) {
    %c0_i32 = arith.constant 0 : i32
    %c0_i32_0 = arith.constant 0 : i32
    %c0_i32_1 = arith.constant 0 : i32
    return %arg0, %c0_i32, %c0_i32_0 : i32, i32, i32
  }
}

module attributes {stable_mosaic.version = 11 : i64} {
  func.func @_affine_relu_matmul_stats_kernel(%arg0: i32, %arg1: memref<64x128xbf16, #tpu.memory_space<vmem>>, %arg2: memref<1x128xf32, #tpu.memory_space<vmem>>, %arg3: memref<1x128xf32, #tpu.memory_space<vmem>>, %arg4: memref<128x128xbf16, #tpu.memory_space<vmem>>, %arg5: memref<64x128xbf16, #tpu.memory_space<vmem>>, %arg6: memref<1x2x128xf32, #tpu.memory_space<vmem>>) attributes {dimension_semantics = [#tpu.dimension_semantics<parallel>], iteration_bounds = array<i64: 2>, scalar_prefetch = 0 : i64, scratch_operands = 0 : i64, tpu.core_type = #tpu.core_type<tc>, window_params = [{transform_indices = @transform_0, window_bounds = array<i64: 64, 128>}, {pipeline_mode = #tpu.pipeline_mode<synchronous>, transform_indices = @transform_1, window_bounds = array<i64: 1, 128>}, {pipeline_mode = #tpu.pipeline_mode<synchronous>, transform_indices = @transform_2, window_bounds = array<i64: 1, 128>}, {pipeline_mode = #tpu.pipeline_mode<synchronous>, transform_indices = @transform_3, window_bounds = array<i64: 128, 128>}, {transform_indices = @transform_4, window_bounds = array<i64: 64, 128>}, {transform_indices = @transform_5, window_bounds = array<i64: 1, 2, 128>}]} {
    %c0 = arith.constant 0 : index
    %c0_0 = arith.constant 0 : index
    %0 = vector.load %arg1[%c0, %c0_0] : memref<64x128xbf16, #tpu.memory_space<vmem>>, vector<64x128xbf16>
    %1 = arith.extf %0 : vector<64x128xbf16> to vector<64x128xf32>
    %c0_1 = arith.constant 0 : index
    %c0_2 = arith.constant 0 : index
    %2 = vector.load %arg2[%c0_1, %c0_2] : memref<1x128xf32, #tpu.memory_space<vmem>>, vector<1x128xf32>
    %3 = vector.broadcast %2 : vector<1x128xf32> to vector<64x128xf32>
    %4 = arith.mulf %1, %3 : vector<64x128xf32>
    %c0_3 = arith.constant 0 : index
    %c0_4 = arith.constant 0 : index
    %5 = vector.load %arg3[%c0_3, %c0_4] : memref<1x128xf32, #tpu.memory_space<vmem>>, vector<1x128xf32>
    %6 = vector.broadcast %5 : vector<1x128xf32> to vector<64x128xf32>
    %7 = arith.addf %4, %6 : vector<64x128xf32>
    %cst = arith.constant 0.000000e+00 : f32
    %8 = vector.broadcast %cst : f32 to vector<64x128xf32>
    %9 = arith.maximumf %7, %8 : vector<64x128xf32>
    %10 = arith.truncf %9 : vector<64x128xf32> to vector<64x128xbf16>
    %c0_5 = arith.constant 0 : index
    %c0_6 = arith.constant 0 : index
    %11 = vector.load %arg4[%c0_5, %c0_6] : memref<128x128xbf16, #tpu.memory_space<vmem>>, vector<128x128xbf16>
    %cst_7 = arith.constant dense<0.000000e+00> : vector<64x128xf32>
    %12 = tpu.matmul %10, %11, %cst_7 {dimension_numbers = #tpu.dot_dimension_numbers<[1], [0], [0], [1], [0, 0, 1, 1], [], []>} : vector<64x128xbf16>, vector<128x128xbf16>, vector<64x128xf32> -> vector<64x128xf32>
    %13 = arith.truncf %12 : vector<64x128xf32> to vector<64x128xbf16>
    %c0_8 = arith.constant 0 : index
    %c0_9 = arith.constant 0 : index
    %14 = vector.load %arg5[%c0_8, %c0_9] : memref<64x128xbf16, #tpu.memory_space<vmem>>, vector<64x128xbf16>
    tpu.vector_store %arg5[%c0_8, %c0_9], %13 {strides = array<i32>} : memref<64x128xbf16, #tpu.memory_space<vmem>>, vector<64x128xbf16>,
    %cst_10 = arith.constant dense<0.000000e+00> : vector<128xf32>
    %15 = vector.multi_reduction <add>, %12, %cst_10 [0] : vector<64x128xf32> to vector<128xf32>
    %16 = vector.shape_cast %15 : vector<128xf32> to vector<1x128xf32>
    %c0_11 = arith.constant 0 : index
    %c0_12 = arith.constant 0 : index
    %c0_13 = arith.constant 0 : index
    %17 = vector.load %arg6[%c0_11, %c0_12, %c0_13] : memref<1x2x128xf32, #tpu.memory_space<vmem>>, vector<1x1x128xf32>
    %18 = vector.shape_cast %17 : vector<1x1x128xf32> to vector<1x128xf32>
    %19 = vector.shape_cast %16 : vector<1x128xf32> to vector<1x1x128xf32>
    tpu.vector_store %arg6[%c0_11, %c0_12, %c0_13], %19 {strides = array<i32>} : memref<1x2x128xf32, #tpu.memory_space<vmem>>, vector<1x1x128xf32>,
    %20 = arith.mulf %12, %12 : vector<64x128xf32>
    %cst_14 = arith.constant dense<0.000000e+00> : vector<128xf32>
    %21 = vector.multi_reduction <add>, %20, %cst_14 [0] : vector<64x128xf32> to vector<128xf32>
    %22 = vector.shape_cast %21 : vector<128xf32> to vector<1x128xf32>
    %c0_15 = arith.constant 0 : index
    %c1 = arith.constant 1 : index
    %c0_16 = arith.constant 0 : index
    %23 = vector.load %arg6[%c0_15, %c1, %c0_16] : memref<1x2x128xf32, #tpu.memory_space<vmem>>, vector<1x1x128xf32>
    %24 = vector.shape_cast %23 : vector<1x1x128xf32> to vector<1x128xf32>
    %25 = vector.shape_cast %22 : vector<1x128xf32> to vector<1x1x128xf32>
    tpu.vector_store %arg6[%c0_15, %c1, %c0_16], %25 {strides = array<i32>} : memref<1x2x128xf32, #tpu.memory_space<vmem>>, vector<1x1x128xf32>,
    return
  }
  func.func @transform_0(%arg0: i32) -> (i32, i32) {
    %c0_i32 = arith.constant 0 : i32
    %c0_i32_0 = arith.constant 0 : i32
    return %arg0, %c0_i32 : i32, i32
  }
  func.func @transform_1(%arg0: i32) -> (i32, i32) {
    %c0_i32 = arith.constant 0 : i32
    %c0_i32_0 = arith.constant 0 : i32
    %c0_i32_1 = arith.constant 0 : i32
    return %c0_i32, %c0_i32_0 : i32, i32
  }
  func.func @transform_2(%arg0: i32) -> (i32, i32) {
    %c0_i32 = arith.constant 0 : i32
    %c0_i32_0 = arith.constant 0 : i32
    %c0_i32_1 = arith.constant 0 : i32
    return %c0_i32, %c0_i32_0 : i32, i32
  }
  func.func @transform_3(%arg0: i32) -> (i32, i32) {
    %c0_i32 = arith.constant 0 : i32
    %c0_i32_0 = arith.constant 0 : i32
    %c0_i32_1 = arith.constant 0 : i32
    return %c0_i32, %c0_i32_0 : i32, i32
  }
  func.func @transform_4(%arg0: i32) -> (i32, i32) {
    %c0_i32 = arith.constant 0 : i32
    %c0_i32_0 = arith.constant 0 : i32
    return %arg0, %c0_i32 : i32, i32
  }
  func.func @transform_5(%arg0: i32) -> (i32, i32, i32) {
    %c0_i32 = arith.constant 0 : i32
    %c0_i32_0 = arith.constant 0 : i32
    %c0_i32_1 = arith.constant 0 : i32
    return %arg0, %c0_i32, %c0_i32_0 : i32, i32, i32
  }
}

module attributes {stable_mosaic.version = 11 : i64} {
  func.func @_affine_add_relu_kernel(%arg0: i32, %arg1: memref<64x128xbf16, #tpu.memory_space<vmem>>, %arg2: memref<1x128xf32, #tpu.memory_space<vmem>>, %arg3: memref<1x128xf32, #tpu.memory_space<vmem>>, %arg4: memref<64x128xbf16, #tpu.memory_space<vmem>>, %arg5: memref<1x128xf32, #tpu.memory_space<vmem>>, %arg6: memref<1x128xf32, #tpu.memory_space<vmem>>, %arg7: memref<64x128xbf16, #tpu.memory_space<vmem>>) attributes {dimension_semantics = [#tpu.dimension_semantics<parallel>], iteration_bounds = array<i64: 2>, scalar_prefetch = 0 : i64, scratch_operands = 0 : i64, tpu.core_type = #tpu.core_type<tc>, window_params = [{transform_indices = @transform_0, window_bounds = array<i64: 64, 128>}, {pipeline_mode = #tpu.pipeline_mode<synchronous>, transform_indices = @transform_1, window_bounds = array<i64: 1, 128>}, {pipeline_mode = #tpu.pipeline_mode<synchronous>, transform_indices = @transform_2, window_bounds = array<i64: 1, 128>}, {transform_indices = @transform_3, window_bounds = array<i64: 64, 128>}, {pipeline_mode = #tpu.pipeline_mode<synchronous>, transform_indices = @transform_4, window_bounds = array<i64: 1, 128>}, {pipeline_mode = #tpu.pipeline_mode<synchronous>, transform_indices = @transform_5, window_bounds = array<i64: 1, 128>}, {transform_indices = @transform_6, window_bounds = array<i64: 64, 128>}]} {
    %c0 = arith.constant 0 : index
    %c0_0 = arith.constant 0 : index
    %0 = vector.load %arg1[%c0, %c0_0] : memref<64x128xbf16, #tpu.memory_space<vmem>>, vector<64x128xbf16>
    %1 = arith.extf %0 : vector<64x128xbf16> to vector<64x128xf32>
    %c0_1 = arith.constant 0 : index
    %c0_2 = arith.constant 0 : index
    %2 = vector.load %arg2[%c0_1, %c0_2] : memref<1x128xf32, #tpu.memory_space<vmem>>, vector<1x128xf32>
    %3 = vector.broadcast %2 : vector<1x128xf32> to vector<64x128xf32>
    %4 = arith.mulf %1, %3 : vector<64x128xf32>
    %c0_3 = arith.constant 0 : index
    %c0_4 = arith.constant 0 : index
    %5 = vector.load %arg3[%c0_3, %c0_4] : memref<1x128xf32, #tpu.memory_space<vmem>>, vector<1x128xf32>
    %6 = vector.broadcast %5 : vector<1x128xf32> to vector<64x128xf32>
    %7 = arith.addf %4, %6 : vector<64x128xf32>
    %c0_5 = arith.constant 0 : index
    %c0_6 = arith.constant 0 : index
    %8 = vector.load %arg4[%c0_5, %c0_6] : memref<64x128xbf16, #tpu.memory_space<vmem>>, vector<64x128xbf16>
    %9 = arith.extf %8 : vector<64x128xbf16> to vector<64x128xf32>
    %c0_7 = arith.constant 0 : index
    %c0_8 = arith.constant 0 : index
    %10 = vector.load %arg5[%c0_7, %c0_8] : memref<1x128xf32, #tpu.memory_space<vmem>>, vector<1x128xf32>
    %11 = vector.broadcast %10 : vector<1x128xf32> to vector<64x128xf32>
    %12 = arith.mulf %9, %11 : vector<64x128xf32>
    %c0_9 = arith.constant 0 : index
    %c0_10 = arith.constant 0 : index
    %13 = vector.load %arg6[%c0_9, %c0_10] : memref<1x128xf32, #tpu.memory_space<vmem>>, vector<1x128xf32>
    %14 = vector.broadcast %13 : vector<1x128xf32> to vector<64x128xf32>
    %15 = arith.addf %12, %14 : vector<64x128xf32>
    %16 = arith.addf %7, %15 : vector<64x128xf32>
    %cst = arith.constant 0.000000e+00 : f32
    %17 = vector.broadcast %cst : f32 to vector<64x128xf32>
    %18 = arith.maximumf %16, %17 : vector<64x128xf32>
    %19 = arith.truncf %18 : vector<64x128xf32> to vector<64x128xbf16>
    %c0_11 = arith.constant 0 : index
    %c0_12 = arith.constant 0 : index
    %20 = vector.load %arg7[%c0_11, %c0_12] : memref<64x128xbf16, #tpu.memory_space<vmem>>, vector<64x128xbf16>
    tpu.vector_store %arg7[%c0_11, %c0_12], %19 {strides = array<i32>} : memref<64x128xbf16, #tpu.memory_space<vmem>>, vector<64x128xbf16>,
    return
  }
  func.func @transform_0(%arg0: i32) -> (i32, i32) {
    %c0_i32 = arith.constant 0 : i32
    %c0_i32_0 = arith.constant 0 : i32
    return %arg0, %c0_i32 : i32, i32
  }
  func.func @transform_1(%arg0: i32) -> (i32, i32) {
    %c0_i32 = arith.constant 0 : i32
    %c0_i32_0 = arith.constant 0 : i32
    %c0_i32_1 = arith.constant 0 : i32
    return %c0_i32, %c0_i32_0 : i32, i32
  }
  func.func @transform_2(%arg0: i32) -> (i32, i32) {
    %c0_i32 = arith.constant 0 : i32
    %c0_i32_0 = arith.constant 0 : i32
    %c0_i32_1 = arith.constant 0 : i32
    return %c0_i32, %c0_i32_0 : i32, i32
  }
  func.func @transform_3(%arg0: i32) -> (i32, i32) {
    %c0_i32 = arith.constant 0 : i32
    %c0_i32_0 = arith.constant 0 : i32
    return %arg0, %c0_i32 : i32, i32
  }
  func.func @transform_4(%arg0: i32) -> (i32, i32) {
    %c0_i32 = arith.constant 0 : i32
    %c0_i32_0 = arith.constant 0 : i32
    %c0_i32_1 = arith.constant 0 : i32
    return %c0_i32, %c0_i32_0 : i32, i32
  }
  func.func @transform_5(%arg0: i32) -> (i32, i32) {
    %c0_i32 = arith.constant 0 : i32
    %c0_i32_0 = arith.constant 0 : i32
    %c0_i32_1 = arith.constant 0 : i32
    return %c0_i32, %c0_i32_0 : i32, i32
  }
  func.func @transform_6(%arg0: i32) -> (i32, i32) {
    %c0_i32 = arith.constant 0 : i32
    %c0_i32_0 = arith.constant 0 : i32
    return %arg0, %c0_i32 : i32, i32
  }
}

module attributes {stable_mosaic.version = 11 : i64} {
  func.func @_matmul_stats_kernel(%arg0: i32, %arg1: memref<64x128xbf16, #tpu.memory_space<vmem>>, %arg2: memref<128x128xbf16, #tpu.memory_space<vmem>>, %arg3: memref<64x128xbf16, #tpu.memory_space<vmem>>, %arg4: memref<1x2x128xf32, #tpu.memory_space<vmem>>) attributes {dimension_semantics = [#tpu.dimension_semantics<parallel>], iteration_bounds = array<i64: 2>, scalar_prefetch = 0 : i64, scratch_operands = 0 : i64, tpu.core_type = #tpu.core_type<tc>, window_params = [{transform_indices = @transform_0, window_bounds = array<i64: 64, 128>}, {pipeline_mode = #tpu.pipeline_mode<synchronous>, transform_indices = @transform_1, window_bounds = array<i64: 128, 128>}, {transform_indices = @transform_2, window_bounds = array<i64: 64, 128>}, {transform_indices = @transform_3, window_bounds = array<i64: 1, 2, 128>}]} {
    %c0 = arith.constant 0 : index
    %c0_0 = arith.constant 0 : index
    %0 = vector.load %arg1[%c0, %c0_0] : memref<64x128xbf16, #tpu.memory_space<vmem>>, vector<64x128xbf16>
    %c0_1 = arith.constant 0 : index
    %c0_2 = arith.constant 0 : index
    %1 = vector.load %arg2[%c0_1, %c0_2] : memref<128x128xbf16, #tpu.memory_space<vmem>>, vector<128x128xbf16>
    %cst = arith.constant dense<0.000000e+00> : vector<64x128xf32>
    %2 = tpu.matmul %0, %1, %cst {dimension_numbers = #tpu.dot_dimension_numbers<[1], [0], [0], [1], [0, 0, 1, 1], [], []>} : vector<64x128xbf16>, vector<128x128xbf16>, vector<64x128xf32> -> vector<64x128xf32>
    %3 = arith.truncf %2 : vector<64x128xf32> to vector<64x128xbf16>
    %c0_3 = arith.constant 0 : index
    %c0_4 = arith.constant 0 : index
    %4 = vector.load %arg3[%c0_3, %c0_4] : memref<64x128xbf16, #tpu.memory_space<vmem>>, vector<64x128xbf16>
    tpu.vector_store %arg3[%c0_3, %c0_4], %3 {strides = array<i32>} : memref<64x128xbf16, #tpu.memory_space<vmem>>, vector<64x128xbf16>,
    %cst_5 = arith.constant dense<0.000000e+00> : vector<128xf32>
    %5 = vector.multi_reduction <add>, %2, %cst_5 [0] : vector<64x128xf32> to vector<128xf32>
    %6 = vector.shape_cast %5 : vector<128xf32> to vector<1x128xf32>
    %c0_6 = arith.constant 0 : index
    %c0_7 = arith.constant 0 : index
    %c0_8 = arith.constant 0 : index
    %7 = vector.load %arg4[%c0_6, %c0_7, %c0_8] : memref<1x2x128xf32, #tpu.memory_space<vmem>>, vector<1x1x128xf32>
    %8 = vector.shape_cast %7 : vector<1x1x128xf32> to vector<1x128xf32>
    %9 = vector.shape_cast %6 : vector<1x128xf32> to vector<1x1x128xf32>
    tpu.vector_store %arg4[%c0_6, %c0_7, %c0_8], %9 {strides = array<i32>} : memref<1x2x128xf32, #tpu.memory_space<vmem>>, vector<1x1x128xf32>,
    %10 = arith.mulf %2, %2 : vector<64x128xf32>
    %cst_9 = arith.constant dense<0.000000e+00> : vector<128xf32>
    %11 = vector.multi_reduction <add>, %10, %cst_9 [0] : vector<64x128xf32> to vector<128xf32>
    %12 = vector.shape_cast %11 : vector<128xf32> to vector<1x128xf32>
    %c0_10 = arith.constant 0 : index
    %c1 = arith.constant 1 : index
    %c0_11 = arith.constant 0 : index
    %13 = vector.load %arg4[%c0_10, %c1, %c0_11] : memref<1x2x128xf32, #tpu.memory_space<vmem>>, vector<1x1x128xf32>
    %14 = vector.shape_cast %13 : vector<1x1x128xf32> to vector<1x128xf32>
    %15 = vector.shape_cast %12 : vector<1x128xf32> to vector<1x1x128xf32>
    tpu.vector_store %arg4[%c0_10, %c1, %c0_11], %15 {strides = array<i32>} : memref<1x2x128xf32, #tpu.memory_space<vmem>>, vector<1x1x128xf32>,
    return
  }
  func.func @transform_0(%arg0: i32) -> (i32, i32) {
    %c0_i32 = arith.constant 0 : i32
    %c0_i32_0 = arith.constant 0 : i32
    return %arg0, %c0_i32 : i32, i32
  }
  func.func @transform_1(%arg0: i32) -> (i32, i32) {
    %c0_i32 = arith.constant 0 : i32
    %c0_i32_0 = arith.constant 0 : i32
    %c0_i32_1 = arith.constant 0 : i32
    return %c0_i32, %c0_i32_0 : i32, i32
  }
  func.func @transform_2(%arg0: i32) -> (i32, i32) {
    %c0_i32 = arith.constant 0 : i32
    %c0_i32_0 = arith.constant 0 : i32
    return %arg0, %c0_i32 : i32, i32
  }
  func.func @transform_3(%arg0: i32) -> (i32, i32, i32) {
    %c0_i32 = arith.constant 0 : i32
    %c0_i32_0 = arith.constant 0 : i32
    %c0_i32_1 = arith.constant 0 : i32
    return %arg0, %c0_i32, %c0_i32_0 : i32, i32, i32
  }
}

</mosaic_0001>

<bundles_post_ra>
// kernel: bottleneck_forward.5
= control target key start
LH: loop header
LB: loop body
LE: loop exit
PB: predicated region body
PF: predicated region fallthrough
CT: control target
= control target key end

     0   :  { %s1012_s12 = smov 0   ;;  %s1224_s0 = inlined_call_operand.vmem [shape: bf16[512,128], index: 0, kind: input, shape index: {}]   ;;  %s1225_s1 = inlined_call_operand.vmem [shape: bf16[128,128], index: 1, kind: input, shape index: {}]   ;;  %s1226_s2 = inlined_call_operand.vmem [shape: bf16[512,128], index: 2, kind: output, shape index: {0}]   ;;  %s1227_s3 = inlined_call_operand.vmem [shape: f32[2,2,128], index: 3, kind: output, shape index: {1}]  }
   0x1 LB: > { %s1018_s13 = sadd.s32 4294967295, %s990_s12   ;;  %p729_p0 = scmp.ge.s32.totalorder %s990_s12, 1  ;;  %s990_s12 = sphi %s1012_s12, %s14_s12  }
   0x2   : > { %p141_p1 = scmp.lt.s32.totalorder %s990_s12, 3 }
   0x4   : > { %p142_p2 = pnand %p729_p0, %p141_p1 }
   0x5   : > { %s730_s22 = sshll.u32 (!%p142_p2), %s1018_s13, 5  ;;  %p181_p4 = scmp.lt.s32.totalorder (!%p142_p2), %s1018_s13, 1 }
   0x6   : > { %145 = sbr.rel (%p142_p2) target bundleno = 290 (0x122), region = 28  ;;  %p170_p3 = scmp.lt.s32.totalorder (!%p142_p2), %s730_s22, 63 }
   0xb   : > { %v856_v0 = vld [vmem:[%s1225_s1 + $0x38] sm:$0xff]  ;;  %v855_v1 = vld [vmem:[%s1225_s1 + $0x30] sm:$0xff]  ;;  %v854_v2 = vld [vmem:[%s1225_s1 + $0x28] sm:$0xff]  ;;  %s1229_s22 = smov (!%p170_p3, %s730_s22), 63  ;;  %s1231_s13 = smov (!%p181_p4, %s1018_s13), 1 }
   0xc   : > { %377 = vmatpush.bf16.msra.mxu0 %v856_v0  ;;  %952 = vmatpush.bf16.msra.mxu1 %v856_v0  ;;  %v853_v3 = vld [vmem:[%s1225_s1 + $0x20] sm:$0xff]  ;;  %v852_v4 = vld [vmem:[%s1225_s1 + $0x18] sm:$0xff]  ;;  %v851_v5 = vld [vmem:[%s1225_s1 + $0x10] sm:$0xff]  ;;  %s731_s29 = sshll.u32 %s1229_s22, 2  ;;  %s734_s11 = sshll.u32 %s1231_s13, 1 }
   0xd   : > { %953 = vmatpush.bf16.msra.mxu2 %v856_v0  ;;  %954 = vmatpush.bf16.msra.mxu3 %v856_v0  ;;  %v850_v6 = vld [vmem:[%s1225_s1 + $0x8] sm:$0xff]  ;;  %v849_v7 = vld [vmem:[%s1225_s1] sm:$0xff]  ;;  %s1055_s7 = scalar_lea.vmem %s1224_s0, %s731_s29  ;;  %s1082_s10 = scalar_lea.vmem %s1226_s2, %s731_s29 }
   0xe   : > { %v833_v8 = vld [vmem:[%s1055_s7] sm:$0xff]  ;;  %v834_v12 = vld [vmem:[%s1055_s7 + $0x8] sm:$0xff]  ;;  %v835_v16 = vld [vmem:[%s1055_s7 + $0x10] sm:$0xff]  ;;  %s184_s16 = scalar_lea.vmem %s1227_s3, %s734_s11 }
   0xf   : > { %v837_v9 = vld [vmem:[%s1055_s7 + $0x20] sm:$0xff]  ;;  %v838_v13 = vld [vmem:[%s1055_s7 + $0x28] sm:$0xff]  ;;  %v839_v17 = vld [vmem:[%s1055_s7 + $0x30] sm:$0xff] }
  0x10   : > { %378 = vmatpush.bf16.msra.mxu0 %v855_v1  ;;  %955 = vmatpush.bf16.msra.mxu1 %v855_v1  ;;  %v841_v10 = vld [vmem:[%s1055_s7 + $0x40] sm:$0xff]  ;;  %v842_v14 = vld [vmem:[%s1055_s7 + $0x48] sm:$0xff]  ;;  %v843_v18 = vld [vmem:[%s1055_s7 + $0x50] sm:$0xff] }
  0x11   : > { %956 = vmatpush.bf16.msra.mxu2 %v855_v1  ;;  %957 = vmatpush.bf16.msra.mxu3 %v855_v1  ;;  %v845_v11 = vld [vmem:[%s1055_s7 + $0x60] sm:$0xff]  ;;  %v846_v15 = vld [vmem:[%s1055_s7 + $0x68] sm:$0xff]  ;;  %v847_v19 = vld [vmem:[%s1055_s7 + $0x70] sm:$0xff] }
  0x12   : > { %v836_v20 = vld [vmem:[%s1055_s7 + $0x18] sm:$0xff] }
  0x13   : > { %v840_v21 = vld [vmem:[%s1055_s7 + $0x38] sm:$0xff] }
  0x14   : > { %379 = vmatpush.bf16.msra.mxu0 %v854_v2  ;;  %958 = vmatpush.bf16.msra.mxu1 %v854_v2  ;;  %v844_v22 = vld [vmem:[%s1055_s7 + $0x58] sm:$0xff] }
  0x15   : > { %959 = vmatpush.bf16.msra.mxu2 %v854_v2  ;;  %960 = vmatpush.bf16.msra.mxu3 %v854_v2  ;;  %v848_v23 = vld [vmem:[%s1055_s7 + $0x78] sm:$0xff] }
  0x18   : > { %380 = vmatpush.bf16.msra.mxu0 %v853_v3  ;;  %961 = vmatpush.bf16.msra.mxu1 %v853_v3 }
  0x19   : > { %962 = vmatpush.bf16.msra.mxu2 %v853_v3  ;;  %963 = vmatpush.bf16.msra.mxu3 %v853_v3 }
  0x1c   : > { %381 = vmatpush.bf16.msra.mxu0 %v852_v4  ;;  %964 = vmatpush.bf16.msra.mxu1 %v852_v4 }
  0x1d   : > { %965 = vmatpush.bf16.msra.mxu2 %v852_v4  ;;  %966 = vmatpush.bf16.msra.mxu3 %v852_v4 }
  0x20   : > { %382 = vmatpush.bf16.msra.mxu0 %v851_v5  ;;  %967 = vmatpush.bf16.msra.mxu1 %v851_v5 }
  0x21   : > { %968 = vmatpush.bf16.msra.mxu2 %v851_v5  ;;  %969 = vmatpush.bf16.msra.mxu3 %v851_v5 }
  0x24   : > { %383 = vmatpush.bf16.msra.mxu0 %v850_v6  ;;  %970 = vmatpush.bf16.msra.mxu1 %v850_v6 }
  0x25   : > { %971 = vmatpush.bf16.msra.mxu2 %v850_v6  ;;  %972 = vmatpush.bf16.msra.mxu3 %v850_v6 }
  0x28   : > { %384 = vmatpush.bf16.msra.mxu0 %v849_v7  ;;  %973 = vmatpush.bf16.msra.mxu1 %v849_v7 }
  0x29   : > { %974 = vmatpush.bf16.msra.mxu2 %v849_v7  ;;  %975 = vmatpush.bf16.msra.mxu3 %v849_v7 }
  0x2b   : > { %385 = vmatmul.bf16.vlgmr.msra.gmra.mxu0 %v833_v8  ;;  %405 = vmatmul.bf16.vlgmr.msra.gmra.mxu1 %v837_v9 }
  0x2c   : > { %425 = vmatmul.bf16.vlgmr.msra.gmra.mxu2 %v841_v10  ;;  %445 = vmatmul.bf16.vlgmr.msra.gmra.mxu3 %v845_v11 }
  0x3b   : > { %390 = vmatmul.bf16.gmra.mxu0 %v834_v12  ;;  %410 = vmatmul.bf16.gmra.mxu1 %v838_v13 }
  0x3c   : > { %430 = vmatmul.bf16.gmra.mxu2 %v842_v14  ;;  %450 = vmatmul.bf16.gmra.mxu3 %v846_v15 }
  0x4b   : > { %395 = vmatmul.bf16.gmra.mxu0 %v835_v16  ;;  %415 = vmatmul.bf16.gmra.mxu1 %v839_v17 }
  0x4c   : > { %435 = vmatmul.bf16.gmra.mxu2 %v843_v18  ;;  %455 = vmatmul.bf16.gmra.mxu3 %v847_v19 }
  0x5b   : > { %400 = vmatmul.bf16.gmra.mxu0 %v836_v20  ;;  %420 = vmatmul.bf16.gmra.mxu1 %v840_v21 }
  0x5c   : > { %440 = vmatmul.bf16.gmra.mxu2 %v844_v22  ;;  %460 = vmatmul.bf16.gmra.mxu3 %v848_v23 }
  0xa8   : > { %v386_v24 = vpop.f32.mrf.mxu0  ;;  %v1073_v25 = vpop.f32.mrf.mxu1 }
  0xa9   : > { %v568_v57 = vmul.f32 %v386_v24, %v386_v24 }
  0xaf   : > { %v1075_v26 = vpop.f32.mrf.mxu2  ;;  %v1088_v31 = vpop.f32.mrf.mxu3 }
  0xb0   : > { %v388_v27 = vpop.f32.mrf.mxu0  ;;  %v1084_v28 = vpop.f32.mrf.mxu1 }
  0xb1   : > { %v860_v29 = vpack.c.bf16 %v388_v27, %v386_v24  ;;  %v880_v30 = vpack.c.bf16 %v1084_v28, %v1073_v25  ;;  %v569_v56 = vmul.f32 %v388_v27, %v388_v27  ;;  %v530_v59 = vadd.f32 %v388_v27, %v386_v24 }
  0xb2   : > { %v576_v27 = vmul.f32 %v1073_v25, %v1073_v25 }
  0xb3   : > { %861 = vst [vmem:[%s1082_s10] sm:$0xff] %v860_v29   ;;  %v600_v60 = vadd.f32 %v569_v56, %v568_v57 }
  0xb4   : > { %940 = vst [vmem:[%s1082_s10 + $0x20] sm:$0xff] %v880_v30  }
  0xb7   : > { %v1092_v32 = vpop.f32.mrf.mxu2  ;;  %v1098_v36 = vpop.f32.mrf.mxu3 }
  0xb8   : > { %v391_v33 = vpop.f32.mrf.mxu0  ;;  %v1094_v34 = vpop.f32.mrf.mxu1  ;;  %v900_v35 = vpack.c.bf16 %v1092_v32, %v1075_v26  ;;  %v920_v37 = vpack.c.bf16 %v1098_v36, %v1088_v31 }
  0xb9   : > { %v570_v58 = vmul.f32 %v391_v33, %v391_v33  ;;  %v531_v62 = vadd.f32 %v530_v59, %v391_v33 }
  0xba   : > { %944 = vst [vmem:[%s1082_s10 + $0x40] sm:$0xff] %v900_v35  }
  0xbb   : > { %948 = vst [vmem:[%s1082_s10 + $0x60] sm:$0xff] %v920_v37   ;;  %v601_v0 = vadd.f32 %v600_v60, %v570_v58 }
  0xbf   : > { %v1104_v38 = vpop.f32.mrf.mxu2  ;;  %v1110_v43 = vpop.f32.mrf.mxu3 }
  0xc0   : > { %v393_v39 = vpop.f32.mrf.mxu0  ;;  %v1106_v40 = vpop.f32.mrf.mxu1 }
  0xc1   : > { %v865_v41 = vpack.c.bf16 %v393_v39, %v391_v33  ;;  %v885_v42 = vpack.c.bf16 %v1106_v40, %v1094_v34  ;;  %v571_v61 = vmul.f32 %v393_v39, %v393_v39  ;;  %v532_v5 = vadd.f32 %v531_v62, %v393_v39 }
  0xc2   : > { %v577_v33 = vmul.f32 %v1084_v28, %v1084_v28  ;;  %v578_v39 = vmul.f32 %v1094_v34, %v1094_v34 }
  0xc3   : > { %937 = vst [vmem:[%s1082_s10 + $0x8] sm:$0xff] %v865_v41   ;;  %v602_v7 = vadd.f32 %v601_v0, %v571_v61 }
  0xc4   : > { %941 = vst [vmem:[%s1082_s10 + $0x28] sm:$0xff] %v885_v42  }
  0xc7   : > { %v1114_v44 = vpop.f32.mrf.mxu2  ;;  %v1120_v48 = vpop.f32.mrf.mxu3 }
  0xc8   : > { %v396_v45 = vpop.f32.mrf.mxu0  ;;  %v1116_v46 = vpop.f32.mrf.mxu1  ;;  %v905_v47 = vpack.c.bf16 %v1114_v44, %v1104_v38  ;;  %v925_v49 = vpack.c.bf16 %v1120_v48, %v1110_v43 }
  0xc9   : > { %v572_v1 = vmul.f32 %v396_v45, %v396_v45  ;;  %v533_v10 = vadd.f32 %v532_v5, %v396_v45  ;;  %v585_v5 = vmul.f32 %v1092_v32, %v1092_v32 }
  0xca   : > { %945 = vst [vmem:[%s1082_s10 + $0x48] sm:$0xff] %v905_v47  }
  0xcb   : > { %949 = vst [vmem:[%s1082_s10 + $0x68] sm:$0xff] %v925_v49   ;;  %v603_v11 = vadd.f32 %v602_v7, %v572_v1 }
  0xcf   : > { %v1126_v50 = vpop.f32.mrf.mxu2  ;;  %v1132_v55 = vpop.f32.mrf.mxu3 }
  0xd0   : > { %v398_v51 = vpop.f32.mrf.mxu0  ;;  %v1128_v52 = vpop.f32.mrf.mxu1 }
  0xd1   : > { %v870_v53 = vpack.c.bf16 %v398_v51, %v396_v45  ;;  %v890_v54 = vpack.c.bf16 %v1128_v52, %v1116_v46  ;;  %v573_v8 = vmul.f32 %v398_v51, %v398_v51  ;;  %v534_v13 = vadd.f32 %v533_v10, %v398_v51 }
  0xd2   : > { %v581_v57 = vmul.f32 %v1128_v52, %v1128_v52  ;;  %v587_v10 = vmul.f32 %v1114_v44, %v1114_v44 }
  0xd3   : > { %938 = vst [vmem:[%s1082_s10 + $0x10] sm:$0xff] %v870_v53   ;;  %v604_v14 = vadd.f32 %v603_v11, %v573_v8 }
  0xd4   : > { %942 = vst [vmem:[%s1082_s10 + $0x30] sm:$0xff] %v890_v54   ;;  %v580_v54 = vmul.f32 %v1116_v46, %v1116_v46 }
  0xd7   : > { %v1136_v63 = vpop.f32.mrf.mxu2  ;;  %v1140_v6 = vpop.f32.mrf.mxu3 }
  0xd8   : > { %v401_v2 = vpop.f32.mrf.mxu0  ;;  %v421_v3 = vpop.f32.mrf.mxu1  ;;  %v910_v4 = vpack.c.bf16 %v1136_v63, %v1126_v50  ;;  %v930_v9 = vpack.c.bf16 %v1140_v6, %v1132_v55 }
  0xd9   : > { %v574_v12 = vmul.f32 %v401_v2, %v401_v2  ;;  %v535_v15 = vadd.f32 %v534_v13, %v401_v2  ;;  %v582_v60 = vmul.f32 %v421_v3, %v421_v3 }
  0xda   : > { %946 = vst [vmem:[%s1082_s10 + $0x50] sm:$0xff] %v910_v4  }
  0xdb   : > { %950 = vst [vmem:[%s1082_s10 + $0x70] sm:$0xff] %v930_v9   ;;  %v605_v17 = vadd.f32 %v604_v14, %v574_v12 }
  0xdf   : > { %v441_v16 = vpop.f32.mrf.mxu2  ;;  %v1146_v24 = vpop.f32.mrf.mxu3 }
  0xe0   : > { %v403_v18 = vpop.f32.mrf.mxu0  ;;  %v423_v19 = vpop.f32.mrf.mxu1 }
  0xe1   : > { %v875_v20 = vpack.c.bf16 %v403_v18, %v401_v2  ;;  %v536_v21 = vadd.f32 %v535_v15, %v403_v18  ;;  %v575_v22 = vmul.f32 %v403_v18, %v403_v18  ;;  %v895_v23 = vpack.c.bf16 %v423_v19, %v421_v3 }
  0xe2   : > { %v583_v1 = vmul.f32 %v423_v19, %v423_v19  ;;  %v584_v2 = vmul.f32 %v1075_v26, %v1075_v26  ;;  %v589_v15 = vmul.f32 %v1136_v63, %v1136_v63 }
  0xe3   : > { %939 = vst [vmem:[%s1082_s10 + $0x18] sm:$0xff] %v875_v20   ;;  %v537_v29 = vadd.f32 %v536_v21, %v1073_v25  ;;  %v606_v30 = vadd.f32 %v605_v17, %v575_v22  ;;  %v579_v25 = vmul.f32 %v1106_v40, %v1106_v40 }
  0xe4   : > { %943 = vst [vmem:[%s1082_s10 + $0x38] sm:$0xff] %v895_v23  }
  0xe5   : > { %v538_v35 = vadd.f32 %v537_v29, %v1084_v28  ;;  %v607_v37 = vadd.f32 %v606_v30, %v576_v27 }
  0xe7   : > { %v539_v41 = vadd.f32 %v538_v35, %v1094_v34  ;;  %v608_v42 = vadd.f32 %v607_v37, %v577_v33  ;;  %v443_v45 = vpop.f32.mrf.mxu2  ;;  %v1162_v53 = vpop.f32.mrf.mxu3  ;;  %v595_v35 = vmul.f32 %v1120_v48, %v1120_v48 }
  0xe8   : > { %v915_v47 = vpack.c.bf16 %v443_v45, %v441_v16  ;;  %v935_v28 = vpack.c.bf16 %v1162_v53, %v1146_v24  ;;  %v591_v22 = vmul.f32 %v443_v45, %v443_v45 }
  0xe9   : > { %v609_v49 = vadd.f32 %v608_v42, %v578_v39  ;;  %v540_v51 = vadd.f32 %v539_v41, %v1106_v40  ;;  %v596_v39 = vmul.f32 %v1132_v55, %v1132_v55 }
  0xea   : > { %947 = vst [vmem:[%s1082_s10 + $0x58] sm:$0xff] %v915_v47  }
  0xeb   : > { %v541_v34 = vadd.f32 %v540_v51, %v1116_v46  ;;  %v610_v56 = vadd.f32 %v609_v49, %v579_v25  ;;  %951 = vst [vmem:[%s1082_s10 + $0x78] sm:$0xff] %v935_v28   ;;  %v598_v49 = vmul.f32 %v1146_v24, %v1146_v24 }
  0xed   : > { %v542_v58 = vadd.f32 %v541_v34, %v1128_v52  ;;  %v611_v59 = vadd.f32 %v610_v56, %v580_v54  ;;  %v586_v52 = vmul.f32 %v1104_v38, %v1104_v38 }
  0xef   : > { %v543_v40 = vadd.f32 %v542_v58, %v421_v3  ;;  %v612_v61 = vadd.f32 %v611_v59, %v581_v57 }
  0xf1   : > { %v613_v62 = vadd.f32 %v612_v61, %v582_v60  ;;  %v544_v0 = vadd.f32 %v543_v40, %v423_v19  ;;  %v590_v19 = vmul.f32 %v441_v16, %v441_v16 }
  0xf3   : > { %v545_v4 = vadd.f32 %v544_v0, %v1075_v26  ;;  %v614_v46 = vadd.f32 %v613_v62, %v583_v1  ;;  %v588_v26 = vmul.f32 %v1126_v50, %v1126_v50 }
  0xf5   : > { %v546_v7 = vadd.f32 %v545_v4, %v1092_v32  ;;  %v615_v8 = vadd.f32 %v614_v46, %v584_v2 }
  0xf7   : > { %v547_v3 = vadd.f32 %v546_v7, %v1104_v38  ;;  %v616_v9 = vadd.f32 %v615_v8, %v585_v5 }
  0xf9   : > { %v617_v11 = vadd.f32 %v616_v9, %v586_v52  ;;  %v548_v12 = vadd.f32 %v547_v3, %v1114_v44  ;;  %v592_v44 = vmul.f32 %v1088_v31, %v1088_v31 }
  0xfb   : > { %v549_v13 = vadd.f32 %v548_v12, %v1126_v50  ;;  %v618_v14 = vadd.f32 %v617_v11, %v587_v10  ;;  %v593_v50 = vmul.f32 %v1098_v36, %v1098_v36 }
  0xfd   : > { %v550_v32 = vadd.f32 %v549_v13, %v1136_v63  ;;  %v619_v17 = vadd.f32 %v618_v14, %v588_v26  ;;  %v594_v63 = vmul.f32 %v1110_v43, %v1110_v43 }
  0xff   : > { %v620_v38 = vadd.f32 %v619_v17, %v589_v15  ;;  %v551_v18 = vadd.f32 %v550_v32, %v441_v16 }
 0x101   : > { %v621_v20 = vadd.f32 %v620_v38, %v590_v19  ;;  %v552_v21 = vadd.f32 %v551_v18, %v443_v45  ;;  %v597_v45 = vmul.f32 %v1140_v6, %v1140_v6 }
 0x103   : > { %v553_v23 = vadd.f32 %v552_v21, %v1088_v31  ;;  %v622_v27 = vadd.f32 %v621_v20, %v591_v22 }
 0x105   : > { %v554_v29 = vadd.f32 %v553_v23, %v1098_v36  ;;  %v623_v30 = vadd.f32 %v622_v27, %v592_v44 }
 0x107   : > { %v555_v16 = vadd.f32 %v554_v29, %v1110_v43  ;;  %v624_v33 = vadd.f32 %v623_v30, %v593_v50 }
 0x109   : > { %v625_v37 = vadd.f32 %v624_v33, %v594_v63  ;;  %v556_v31 = vadd.f32 %v555_v16, %v1120_v48 }
 0x10b   : > { %v557_v36 = vadd.f32 %v556_v31, %v1132_v55  ;;  %v626_v41 = vadd.f32 %v625_v37, %v595_v35  ;;  %v599_v55 = vmul.f32 %v1162_v53, %v1162_v53 }
 0x10d   : > { %v558_v42 = vadd.f32 %v557_v36, %v1140_v6  ;;  %v627_v43 = vadd.f32 %v626_v41, %v596_v39 }
 0x10f   : > { %v628_v47 = vadd.f32 %v627_v43, %v597_v45  ;;  %v559_v25 = vadd.f32 %v558_v42, %v1146_v24 }
 0x111   : > { %v629_v48 = vadd.f32 %v628_v47, %v598_v49  ;;  %v560_v51 = vadd.f32 %v559_v25, %v1162_v53 }
 0x113   : > { %v561_v28 = vrot.slane %v560_v51, 4  ;;  %v630_v54 = vadd.f32 %v629_v48, %v599_v55 }
 0x115   : > { %v562_v34 = vadd.f32 %v561_v28, %v560_v51  ;;  %v631_v56 = vrot.slane %v630_v54, 4 }
 0x117   : > { %v563_v6 = vrot.slane %v562_v34, 2  ;;  %v632_v57 = vadd.f32 %v631_v56, %v630_v54 }
 0x119   : > { %v564_v58 = vadd.f32 %v563_v6, %v562_v34  ;;  %v633_v59 = vrot.slane %v632_v57, 2 }
 0x11b   : > { %v565_v40 = vrot.slane %v564_v58, 1  ;;  %v634_v60 = vadd.f32 %v633_v59, %v632_v57 }
 0x11d   : > { %v566_v24 = vadd.f32 %v565_v40, %v564_v58  ;;  %v635_v61 = vrot.slane %v634_v60, 1 }
 0x11f   : > { %567 = vst [vmem:[%s184_s16] sm:$0x1] %v566_v24  ;;  %v636_v53 = vadd.f32 %v635_v61, %v634_v60 }
 0x121   : > { %637 = vst [vmem:[%s184_s16 + $0x1] sm:$0x1] %v636_v53 }
 0x122 PF: > { %s14_s12 = sadd.s32 1, %s990_s12  }
 0x123   : > { %p11_p5 = scmp.ge.s32.totalorder %s14_s12, 4  }
 0x125   :  { %13 = sbr.rel (!%p11_p5) target bundleno = 1 (0x1), region = 70 }

// kernel: bottleneck_forward.7
= control target key start
LH: loop header
LB: loop body
LE: loop exit
PB: predicated region body
PF: predicated region fallthrough
CT: control target
= control target key end

     0   :  { %s689_s18 = smov 0   ;;  %s751_s0 = inlined_call_operand.vmem [shape: bf16[128,128], index: 0, kind: input, shape index: {}]   ;;  %s752_s1 = inlined_call_operand.vmem [shape: f32[1,128], index: 1, kind: input, shape index: {}]   ;;  %s753_s2 = inlined_call_operand.vmem [shape: f32[1,128], index: 2, kind: input, shape index: {}]   ;;  %s754_s3 = inlined_call_operand.vmem [shape: bf16[128,128], index: 3, kind: input, shape index: {}]   ;;  %s755_s4 = inlined_call_operand.vmem [shape: bf16[128,128], index: 4, kind: output, shape index: {0}]   ;;  %s756_s5 = inlined_call_operand.vmem [shape: f32[2,2,128], index: 5, kind: output, shape index: {1}]  }
   0x1 LB: > { %s695_s19 = sadd.s32 4294967295, %s657_s18   ;;  %p527_p0 = scmp.ge.s32.totalorder %s657_s18, 1  ;;  %s657_s18 = sphi %s689_s18, %s16_s18  }
   0x2   : > { %p191_p1 = scmp.lt.s32.totalorder %s657_s18, 3 }
   0x4   : > { %p192_p2 = pnand %p527_p0, %p191_p1 }
   0x5   : > { %s528_s22 = sshll.u32 (!%p192_p2), %s695_s19, 3  ;;  %p235_p4 = scmp.lt.s32.totalorder (!%p192_p2), %s695_s19, 1 }
   0x6   : > { %195 = sbr.rel (%p192_p2) target bundleno = 206 (0xce), region = 36  ;;  %p224_p3 = scmp.lt.s32.totalorder (!%p192_p2), %s528_s22, 15 }
   0xb   : > { %v574_v0 = vld [vmem:[%s754_s3 + $0x38] sm:$0xff]  ;;  %v573_v1 = vld [vmem:[%s754_s3 + $0x30] sm:$0xff]  ;;  %s758_s22 = smov (!%p224_p3, %s528_s22), 15  ;;  %v572_v2 = vld [vmem:[%s754_s3 + $0x28] sm:$0xff]  ;;  %s760_s19 = smov (!%p235_p4, %s695_s19), 1 }
   0xc   : > { %355 = vmatpush.bf16.msra.mxu0 %v574_v0  ;;  %617 = vmatpush.bf16.msra.mxu1 %v574_v0  ;;  %s529_s25 = sshll.u32 %s758_s22, 2  ;;  %v571_v4 = vld [vmem:[%s754_s3 + $0x20] sm:$0xff]  ;;  %v570_v14 = vld [vmem:[%s754_s3 + $0x18] sm:$0xff]  ;;  %v569_v24 = vld [vmem:[%s754_s3 + $0x10] sm:$0xff]  ;;  %s532_s22 = sshll.u32 %s760_s19, 1 }
   0xd   : > { %618 = vmatpush.bf16.msra.mxu2 %v574_v0  ;;  %619 = vmatpush.bf16.msra.mxu3 %v574_v0  ;;  %s227_s30 = scalar_lea.vmem %s751_s0, %s529_s25  ;;  %v649_v9 = vld [vmem:[%s752_s1] ss:$0 sm:$0xff]  ;;  %v568_v33 = vld [vmem:[%s754_s3 + $0x8] sm:$0xff]  ;;  %s233_s26 = scalar_lea.vmem %s755_s4, %s529_s25 }
   0xe   : > { %v576_v3 = vld [vmem:[%s227_s30] sm:$0xff]   ;;  %v611_v5 = vld [vmem:[%s227_s30 + $0x8] sm:$0xff]   ;;  %v612_v6 = vld [vmem:[%s227_s30 + $0x10] sm:$0xff]   ;;  %s238_s28 = scalar_lea.vmem %s756_s5, %s532_s22 }
   0xf   : > { %v613_v7 = vld [vmem:[%s227_s30 + $0x18] sm:$0xff]   ;;  %v577_v8 = vunpack.c.l.bf16 %v576_v3  ;;  %v578_v10 = vunpack.c.h.bf16 %v576_v3  ;;  %v581_v11 = vunpack.c.l.bf16 %v611_v5  ;;  %v582_v12 = vunpack.c.h.bf16 %v611_v5  ;;  %v650_v19 = vld [vmem:[%s753_s2] ss:$0 sm:$0xff] }
  0x10   : > { %356 = vmatpush.bf16.msra.mxu0 %v573_v1  ;;  %620 = vmatpush.bf16.msra.mxu1 %v573_v1  ;;  %v585_v13 = vunpack.c.l.bf16 %v612_v6  ;;  %v586_v15 = vunpack.c.h.bf16 %v612_v6  ;;  %v589_v16 = vunpack.c.l.bf16 %v613_v7  ;;  %v590_v17 = vunpack.c.h.bf16 %v613_v7  ;;  %v567_v41 = vld [vmem:[%s754_s3] sm:$0xff] }
  0x11   : > { %621 = vmatpush.bf16.msra.mxu2 %v573_v1  ;;  %622 = vmatpush.bf16.msra.mxu3 %v573_v1  ;;  %v259_v18 = vmul.f32 %v649_v9, %v577_v8  ;;  %v260_v20 = vmul.f32 %v649_v9, %v578_v10  ;;  %v261_v21 = vmul.f32 %v649_v9, %v581_v11 }
  0x12   : > { %v262_v22 = vmul.f32 %v649_v9, %v582_v12  ;;  %v263_v23 = vmul.f32 %v649_v9, %v585_v13  ;;  %v264_v25 = vmul.f32 %v649_v9, %v586_v15  ;;  %v265_v26 = vmul.f32 %v649_v9, %v589_v16 }
  0x13   : > { %v266_v27 = vmul.f32 %v649_v9, %v590_v17  ;;  %v271_v28 = vadd.f32 %v650_v19, %v259_v18  ;;  %v272_v29 = vadd.f32 %v650_v19, %v260_v20  ;;  %v273_v30 = vadd.f32 %v650_v19, %v261_v21 }
  0x14   : > { %357 = vmatpush.bf16.msra.mxu0 %v572_v2  ;;  %623 = vmatpush.bf16.msra.mxu1 %v572_v2  ;;  %v274_v31 = vadd.f32 %v650_v19, %v262_v22  ;;  %v275_v32 = vadd.f32 %v650_v19, %v263_v23  ;;  %v276_v34 = vadd.f32 %v650_v19, %v264_v25 }
  0x15   : > { %624 = vmatpush.bf16.msra.mxu2 %v572_v2  ;;  %625 = vmatpush.bf16.msra.mxu3 %v572_v2  ;;  %v277_v35 = vadd.f32 %v650_v19, %v265_v26  ;;  %v278_v36 = vadd.f32 %v650_v19, %v266_v27  ;;  %v279_v37 = vmax.f32 %v271_v28, 0.0  ;;  %v280_v38 = vmax.f32 %v272_v29, 0.0 }
  0x16   : > { %v281_v39 = vmax.f32 %v273_v30, 0.0  ;;  %v282_v40 = vmax.f32 %v274_v31, 0.0  ;;  %v283_v42 = vmax.f32 %v275_v32, 0.0  ;;  %v284_v43 = vmax.f32 %v276_v34, 0.0 }
  0x17   : > { %v285_v44 = vmax.f32 %v277_v35, 0.0  ;;  %v286_v45 = vmax.f32 %v278_v36, 0.0  ;;  %v287_v46 = vpack.c.bf16 %v280_v38, %v279_v37 }
  0x18   : > { %358 = vmatpush.bf16.msra.mxu0 %v571_v4  ;;  %626 = vmatpush.bf16.msra.mxu1 %v571_v4  ;;  %v288_v47 = vpack.c.bf16 %v282_v40, %v281_v39  ;;  %v289_v48 = vpack.c.bf16 %v284_v43, %v283_v42 }
  0x19   : > { %627 = vmatpush.bf16.msra.mxu2 %v571_v4  ;;  %628 = vmatpush.bf16.msra.mxu3 %v571_v4  ;;  %v290_v49 = vpack.c.bf16 %v286_v45, %v285_v44 }
  0x1c   : > { %359 = vmatpush.bf16.msra.mxu0 %v570_v14  ;;  %629 = vmatpush.bf16.msra.mxu1 %v570_v14 }
  0x1d   : > { %630 = vmatpush.bf16.msra.mxu2 %v570_v14  ;;  %631 = vmatpush.bf16.msra.mxu3 %v570_v14 }
  0x20   : > { %360 = vmatpush.bf16.msra.mxu0 %v569_v24  ;;  %632 = vmatpush.bf16.msra.mxu1 %v569_v24 }
  0x21   : > { %633 = vmatpush.bf16.msra.mxu2 %v569_v24  ;;  %634 = vmatpush.bf16.msra.mxu3 %v569_v24 }
  0x24   : > { %361 = vmatpush.bf16.msra.mxu0 %v568_v33  ;;  %635 = vmatpush.bf16.msra.mxu1 %v568_v33 }
  0x25   : > { %636 = vmatpush.bf16.msra.mxu2 %v568_v33  ;;  %637 = vmatpush.bf16.msra.mxu3 %v568_v33 }
  0x28   : > { %362 = vmatpush.bf16.msra.mxu0 %v567_v41  ;;  %638 = vmatpush.bf16.msra.mxu1 %v567_v41 }
  0x29   : > { %639 = vmatpush.bf16.msra.mxu2 %v567_v41  ;;  %640 = vmatpush.bf16.msra.mxu3 %v567_v41 }
  0x2b   : > { %363 = vmatmul.bf16.vlgmr.msra.gmra.mxu0 %v287_v46  ;;  %368 = vmatmul.bf16.vlgmr.msra.gmra.mxu1 %v288_v47 }
  0x2c   : > { %373 = vmatmul.bf16.vlgmr.msra.gmra.mxu2 %v289_v48  ;;  %378 = vmatmul.bf16.vlgmr.msra.gmra.mxu3 %v290_v49 }
  0xa8   : > { %v364_v50 = vpop.f32.mrf.mxu0  ;;  %v369_v51 = vpop.f32.mrf.mxu1 }
  0xa9   : > { %v414_v54 = vmul.f32 %v364_v50, %v364_v50  ;;  %v416_v61 = vmul.f32 %v369_v51, %v369_v51 }
  0xaf   : > { %v374_v52 = vpop.f32.mrf.mxu2  ;;  %v379_v53 = vpop.f32.mrf.mxu3 }
  0xb0   : > { %v366_v55 = vpop.f32.mrf.mxu0  ;;  %v371_v56 = vpop.f32.mrf.mxu1  ;;  %v418_v3 = vmul.f32 %v374_v52, %v374_v52  ;;  %v420_v13 = vmul.f32 %v379_v53, %v379_v53 }
  0xb1   : > { %v594_v57 = vpack.c.bf16 %v366_v55, %v364_v50  ;;  %v400_v58 = vadd.f32 %v366_v55, %v364_v50  ;;  %v415_v59 = vmul.f32 %v366_v55, %v366_v55  ;;  %v599_v60 = vpack.c.bf16 %v371_v56, %v369_v51 }
  0xb2   : > { %v417_v1 = vmul.f32 %v371_v56, %v371_v56 }
  0xb3   : > { %595 = vst [vmem:[%s233_s26] sm:$0xff] %v594_v57   ;;  %v422_v62 = vadd.f32 %v415_v59, %v414_v54  ;;  %v401_v63 = vadd.f32 %v400_v58, %v369_v51 }
  0xb4   : > { %614 = vst [vmem:[%s233_s26 + $0x8] sm:$0xff] %v599_v60  }
  0xb5   : > { %v402_v0 = vadd.f32 %v401_v63, %v371_v56  ;;  %v423_v2 = vadd.f32 %v422_v62, %v416_v61 }
  0xb7   : > { %v424_v4 = vadd.f32 %v423_v2, %v417_v1  ;;  %v376_v5 = vpop.f32.mrf.mxu2  ;;  %v403_v6 = vadd.f32 %v402_v0, %v374_v52  ;;  %v381_v7 = vpop.f32.mrf.mxu3 }
  0xb8   : > { %v604_v8 = vpack.c.bf16 %v376_v5, %v374_v52  ;;  %v609_v9 = vpack.c.bf16 %v381_v7, %v379_v53  ;;  %v419_v11 = vmul.f32 %v376_v5, %v376_v5  ;;  %v421_v17 = vmul.f32 %v381_v7, %v381_v7 }
  0xb9   : > { %v404_v10 = vadd.f32 %v403_v6, %v376_v5  ;;  %v425_v12 = vadd.f32 %v424_v4, %v418_v3 }
  0xba   : > { %615 = vst [vmem:[%s233_s26 + $0x10] sm:$0xff] %v604_v8  }
  0xbb   : > { %v426_v14 = vadd.f32 %v425_v12, %v419_v11  ;;  %616 = vst [vmem:[%s233_s26 + $0x18] sm:$0xff] %v609_v9   ;;  %v405_v15 = vadd.f32 %v404_v10, %v379_v53 }
  0xbd   : > { %v406_v16 = vadd.f32 %v405_v15, %v381_v7  ;;  %v427_v18 = vadd.f32 %v426_v14, %v420_v13 }
  0xbf   : > { %v407_v19 = vrot.slane %v406_v16, 4  ;;  %v428_v20 = vadd.f32 %v427_v18, %v421_v17 }
  0xc1   : > { %v408_v21 = vadd.f32 %v407_v19, %v406_v16  ;;  %v429_v22 = vrot.slane %v428_v20, 4 }
  0xc3   : > { %v409_v23 = vrot.slane %v408_v21, 2  ;;  %v430_v24 = vadd.f32 %v429_v22, %v428_v20 }
  0xc5   : > { %v410_v25 = vadd.f32 %v409_v23, %v408_v21  ;;  %v431_v26 = vrot.slane %v430_v24, 2 }
  0xc7   : > { %v411_v27 = vrot.slane %v410_v25, 1  ;;  %v432_v28 = vadd.f32 %v431_v26, %v430_v24 }
  0xc9   : > { %v412_v29 = vadd.f32 %v411_v27, %v410_v25  ;;  %v433_v30 = vrot.slane %v432_v28, 1 }
  0xcb   : > { %413 = vst [vmem:[%s238_s28] sm:$0x1] %v412_v29  ;;  %v434_v31 = vadd.f32 %v433_v30, %v432_v28 }
  0xcd   : > { %435 = vst [vmem:[%s238_s28 + $0x1] sm:$0x1] %v434_v31 }
  0xce PF: > { %s16_s18 = sadd.s32 1, %s657_s18  }
  0xcf   : > { %p13_p5 = scmp.ge.s32.totalorder %s16_s18, 4  }
  0xd1   :  { %15 = sbr.rel (!%p13_p5) target bundleno = 1 (0x1), region = 78 }

// kernel: bottleneck_forward.6
= control target key start
LH: loop header
LB: loop body
LE: loop exit
PB: predicated region body
PF: predicated region fallthrough
CT: control target
= control target key end

     0   :  { %s2016_s12 = smov 0   ;;  %s2377_s0 = inlined_call_operand.vmem [shape: bf16[128,1152], index: 0, kind: input, shape index: {}]   ;;  %s2378_s1 = inlined_call_operand.vmem [shape: bf16[1152,128], index: 1, kind: input, shape index: {}]   ;;  %s2379_s2 = inlined_call_operand.vmem [shape: bf16[128,128], index: 2, kind: output, shape index: {0}]   ;;  %s2380_s3 = inlined_call_operand.vmem [shape: f32[2,2,128], index: 3, kind: output, shape index: {1}]  }
   0x1 LB: > { %s2022_s13 = sadd.s32 4294967295, %s1994_s12   ;;  %p1392_p0 = scmp.ge.s32.totalorder %s1994_s12, 1  ;;  %s1994_s12 = sphi %s2016_s12, %s14_s12  }
   0x2   : > { %p142_p1 = scmp.lt.s32.totalorder %s1994_s12, 3 }
   0x4   : > { %p143_p2 = pnand %p1392_p0, %p142_p1 }
   0x5   : > { %s1393_s30 = sshll.u32 (!%p143_p2), %s2022_s13, 3  ;;  %p184_p4 = scmp.lt.s32.totalorder (!%p143_p2), %s2022_s13, 1 }
   0x6   : > { %146 = sbr.rel (%p143_p2) target bundleno = 346 (0x15a), region = 28  ;;  %p172_p3 = scmp.lt.s32.totalorder (!%p143_p2), %s1393_s30, 15 }
   0xb   : > { %v1875_v0 = vld [vmem:[%s2378_s1 + $0x38] sm:$0xff]  ;;  %v1874_v2 = vld [vmem:[%s2378_s1 + $0x30] sm:$0xff]  ;;  %v1873_v6 = vld [vmem:[%s2378_s1 + $0x28] sm:$0xff]  ;;  %s2382_s30 = smov (!%p172_p3, %s1393_s30), 15  ;;  %s2384_s13 = smov (!%p184_p4, %s2022_s13), 1 }
   0xc   : > { %v1891_v1 = vld [vmem:[%s2378_s1 + $0xb8] sm:$0xff]  ;;  %1963 = vmatpush.bf16.msra.mxu1 %v1875_v0  ;;  %988 = vmatpush.bf16.msra.mxu0 %v1875_v0  ;;  %v1890_v3 = vld [vmem:[%s2378_s1 + $0xb0] sm:$0xff]  ;;  %v1889_v7 = vld [vmem:[%s2378_s1 + $0xa8] sm:$0xff]  ;;  %s1979_s22 = smul.u32 36, %s2382_s30 }
   0xd   : > { %1046 = vmatpush.bf16.msra.mxu2 %v1891_v1  ;;  %v1899_v4 = vld [vmem:[%s2378_s1 + $0xf8] sm:$0xff]  ;;  %v1898_v5 = vld [vmem:[%s2378_s1 + $0xf0] sm:$0xff]  ;;  %v1897_v8 = vld [vmem:[%s2378_s1 + $0xe8] sm:$0xff] }
   0xe   : > { %1075 = vmatpush.bf16.msra.mxu3 %v1899_v4  ;;  %v1872_v9 = vld [vmem:[%s2378_s1 + $0x20] sm:$0xff]  ;;  %v1871_v12 = vld [vmem:[%s2378_s1 + $0x18] sm:$0xff]  ;;  %v1870_v15 = vld [vmem:[%s2378_s1 + $0x10] sm:$0xff]  ;;  %s2090_s5 = scalar_lea.vmem %s2377_s0, %s1979_s22 }
   0xf   : > { %v1888_v10 = vld [vmem:[%s2378_s1 + $0xa0] sm:$0xff]  ;;  %v1887_v13 = vld [vmem:[%s2378_s1 + $0x98] sm:$0xff]  ;;  %v1886_v16 = vld [vmem:[%s2378_s1 + $0x90] sm:$0xff] }
  0x10   : > { %1964 = vmatpush.bf16.msra.mxu1 %v1874_v2  ;;  %989 = vmatpush.bf16.msra.mxu0 %v1874_v2  ;;  %v1896_v11 = vld [vmem:[%s2378_s1 + $0xe0] sm:$0xff]  ;;  %v1895_v14 = vld [vmem:[%s2378_s1 + $0xd8] sm:$0xff]  ;;  %v1894_v17 = vld [vmem:[%s2378_s1 + $0xd0] sm:$0xff] }
  0x11   : > { %1047 = vmatpush.bf16.msra.mxu2 %v1890_v3  ;;  %v1869_v18 = vld [vmem:[%s2378_s1 + $0x8] sm:$0xff]  ;;  %v1868_v20 = vld [vmem:[%s2378_s1] sm:$0xff]  ;;  %v1472_v21 = vld [vmem:[%s2090_s5 + $0x90] sm:$0xf] }
  0x12   : > { %1076 = vmatpush.bf16.msra.mxu3 %v1898_v5  ;;  %v1885_v19 = vld [vmem:[%s2378_s1 + $0x88] sm:$0xff]  ;;  %v1883_v22 = vld [vmem:[%s2378_s1 + $0x78] sm:$0xff]  ;;  %v1854_v24 = vld [vmem:[%s2090_s5 + $0xb0] sm:$0xf0] }
  0x13   : > { %v1893_v23 = vld [vmem:[%s2378_s1 + $0xc8] sm:$0xff]  ;;  %v1400_v25 = vld [vmem:[%s2090_s5] sm:$0xf]  ;;  %v1836_v26 = vld [vmem:[%s2090_s5 + $0x20] sm:$0xf0]  ;;  %v1473_v32 = vor.u32 %v1854_v24, %v1472_v21 }
  0x14   : > { %1965 = vmatpush.bf16.msra.mxu1 %v1873_v6  ;;  %990 = vmatpush.bf16.msra.mxu0 %v1873_v6  ;;  %v1884_v27 = vld [vmem:[%s2378_s1 + $0x80] sm:$0xff]  ;;  %v1408_v28 = vld [vmem:[%s2090_s5 + $0x8] sm:$0xf]  ;;  %v1837_v29 = vld [vmem:[%s2090_s5 + $0x28] sm:$0xf0]  ;;  %v1401_v33 = vor.u32 %v1836_v26, %v1400_v25 }
  0x15   : > { %1048 = vmatpush.bf16.msra.mxu2 %v1889_v7  ;;  %v1907_v30 = vld [vmem:[%s2378_s1 + $0x138] sm:$0xff]  ;;  %v1409_v34 = vor.u32 %v1837_v29, %v1408_v28  ;;  %v1892_v35 = vld [vmem:[%s2378_s1 + $0xc0] sm:$0xff]  ;;  %v1833_v36 = vld [vmem:[%s2090_s5 + $0xc] sm:$0xf] }
  0x16   : > { %1077 = vmatpush.bf16.msra.mxu3 %v1897_v8  ;;  %v1923_v31 = vld [vmem:[%s2378_s1 + $0x1b8] sm:$0xff]  ;;  %v1410_v37 = vld [vmem:[%s2090_s5 + $0x2c] sm:$0xf0]  ;;  %v1881_v43 = vld [vmem:[%s2378_s1 + $0x68] sm:$0xff] }
  0x17   : > { %v1882_v38 = vld [vmem:[%s2378_s1 + $0x70] sm:$0xff]  ;;  %v1931_v39 = vld [vmem:[%s2378_s1 + $0x1f8] sm:$0xff]  ;;  %v1413_v42 = vor.u32 %v1833_v36, %v1410_v37  ;;  %v1905_v45 = vld [vmem:[%s2378_s1 + $0x128] sm:$0xff] }
  0x18   : > { %1966 = vmatpush.bf16.msra.mxu1 %v1872_v9  ;;  %991 = vmatpush.bf16.msra.mxu0 %v1872_v9  ;;  %v1906_v40 = vld [vmem:[%s2378_s1 + $0x130] sm:$0xff]  ;;  %v1921_v46 = vld [vmem:[%s2378_s1 + $0x1a8] sm:$0xff]  ;;  %v1880_v47 = vld [vmem:[%s2378_s1 + $0x60] sm:$0xff] }
  0x19   : > { %1049 = vmatpush.bf16.msra.mxu2 %v1888_v10  ;;  %v1922_v41 = vld [vmem:[%s2378_s1 + $0x1b0] sm:$0xff]  ;;  %v1929_v48 = vld [vmem:[%s2378_s1 + $0x1e8] sm:$0xff]  ;;  %v1904_v49 = vld [vmem:[%s2378_s1 + $0x120] sm:$0xff] }
  0x1a   : > { %1078 = vmatpush.bf16.msra.mxu3 %v1896_v11  ;;  %v1930_v44 = vld [vmem:[%s2378_s1 + $0x1f0] sm:$0xff]  ;;  %v1920_v50 = vld [vmem:[%s2378_s1 + $0x1a0] sm:$0xff]  ;;  %v1508_v51 = vld [vmem:[%s2090_s5 + $0xd8] sm:$0xf] }
  0x1b   : > { %v1863_v52 = vld [vmem:[%s2090_s5 + $0xf8] sm:$0xf0]  ;;  %v1436_v53 = vld [vmem:[%s2090_s5 + $0x48] sm:$0xf]  ;;  %v1845_v54 = vld [vmem:[%s2090_s5 + $0x68] sm:$0xf0] }
  0x1c   : > { %1967 = vmatpush.bf16.msra.mxu1 %v1871_v12  ;;  %992 = vmatpush.bf16.msra.mxu0 %v1871_v12  ;;  %v1879_v55 = vld [vmem:[%s2378_s1 + $0x58] sm:$0xff]  ;;  %v1444_v56 = vld [vmem:[%s2090_s5 + $0x50] sm:$0xf]  ;;  %v1846_v57 = vld [vmem:[%s2090_s5 + $0x70] sm:$0xf0]  ;;  %v1509_v59 = vor.u32 %v1863_v52, %v1508_v51  ;;  %v1437_v60 = vor.u32 %v1845_v54, %v1436_v53 }
  0x1d   : > { %1050 = vmatpush.bf16.msra.mxu2 %v1887_v13  ;;  %v1903_v58 = vld [vmem:[%s2378_s1 + $0x118] sm:$0xff]  ;;  %v1445_v61 = vor.u32 %v1846_v57, %v1444_v56  ;;  %v1842_v62 = vld [vmem:[%s2090_s5 + $0x54] sm:$0xf]  ;;  %v1877_v4 = vld [vmem:[%s2378_s1 + $0x48] sm:$0xff] }
  0x1e   : > { %1079 = vmatpush.bf16.msra.mxu3 %v1895_v14  ;;  %v1446_v63 = vld [vmem:[%s2090_s5 + $0x74] sm:$0xf0]  ;;  %v1878_v0 = vld [vmem:[%s2378_s1 + $0x50] sm:$0xff]  ;;  %v1928_v5 = vld [vmem:[%s2378_s1 + $0x1e0] sm:$0xff] }
  0x1f   : > { %v1902_v1 = vld [vmem:[%s2378_s1 + $0x110] sm:$0xff]  ;;  %v1449_v2 = vor.u32 %v1842_v62, %v1446_v63  ;;  %v1919_v3 = vld [vmem:[%s2378_s1 + $0x198] sm:$0xff]  ;;  %v1901_v6 = vld [vmem:[%s2378_s1 + $0x108] sm:$0xff] }
  0x20   : > { %1968 = vmatpush.bf16.msra.mxu1 %v1870_v15  ;;  %993 = vmatpush.bf16.msra.mxu0 %v1870_v15  ;;  %v1918_v7 = vld [vmem:[%s2378_s1 + $0x190] sm:$0xff]  ;;  %v1927_v8 = vld [vmem:[%s2378_s1 + $0x1d8] sm:$0xff]  ;;  %v1876_v9 = vld [vmem:[%s2378_s1 + $0x40] sm:$0xff] }
  0x21   : > { %1051 = vmatpush.bf16.msra.mxu2 %v1886_v16  ;;  %v1915_v10 = vld [vmem:[%s2378_s1 + $0x178] sm:$0xff]  ;;  %v1900_v11 = vld [vmem:[%s2378_s1 + $0x100] sm:$0xff]  ;;  %v1402_v14 = vld [vmem:[%s2090_s5 + $0x24] sm:$0xf0] }
  0x22   : > { %1080 = vmatpush.bf16.msra.mxu3 %v1894_v17  ;;  %v1832_v12 = vld [vmem:[%s2090_s5 + $0x4] sm:$0xf]  ;;  %v1939_v13 = vld [vmem:[%s2378_s1 + $0x238] sm:$0xff]  ;;  %v1416_v15 = vld [vmem:[%s2090_s5 + $0x10] sm:$0xf] }
  0x23   : > { %v1838_v16 = vld [vmem:[%s2090_s5 + $0x30] sm:$0xf0]  ;;  %v1480_v17 = vld [vmem:[%s2090_s5 + $0x98] sm:$0xf]  ;;  %v1482_v24 = vld [vmem:[%s2090_s5 + $0xbc] sm:$0xf0] }
  0x24   : > { %1969 = vmatpush.bf16.msra.mxu1 %v1869_v18  ;;  %994 = vmatpush.bf16.msra.mxu0 %v1869_v18  ;;  %v1855_v18 = vld [vmem:[%s2090_s5 + $0xb8] sm:$0xf0]  ;;  %v1417_v21 = vor.u32 %v1838_v16, %v1416_v15  ;;  %v1938_v25 = vld [vmem:[%s2378_s1 + $0x230] sm:$0xff]  ;;  %v1913_v26 = vld [vmem:[%s2378_s1 + $0x168] sm:$0xff] }
  0x25   : > { %1052 = vmatpush.bf16.msra.mxu2 %v1885_v19  ;;  %v1914_v19 = vld [vmem:[%s2378_s1 + $0x170] sm:$0xff]  ;;  %v1937_v29 = vld [vmem:[%s2378_s1 + $0x228] sm:$0xff]  ;;  %v1924_v51 = vld [vmem:[%s2378_s1 + $0x1c0] sm:$0xff] }
  0x26   : > { %1081 = vmatpush.bf16.msra.mxu3 %v1893_v23  ;;  %v1851_v23 = vld [vmem:[%s2090_s5 + $0x9c] sm:$0xf]  ;;  %v1841_v36 = vld [vmem:[%s2090_s5 + $0x4c] sm:$0xf]  ;;  %v1438_v37 = vld [vmem:[%s2090_s5 + $0x6c] sm:$0xf0] }
  0x27   : > { %v1485_v28 = vor.u32 %v1851_v23, %v1482_v24  ;;  %v1908_v52 = vld [vmem:[%s2378_s1 + $0x140] sm:$0xff]  ;;  %v1934_v53 = vld [vmem:[%s2378_s1 + $0x210] sm:$0xff]  ;;  %v1933_v54 = vld [vmem:[%s2378_s1 + $0x208] sm:$0xff] }
  0x28   : > { %1970 = vmatpush.bf16.msra.mxu1 %v1868_v20  ;;  %995 = vmatpush.bf16.msra.mxu0 %v1868_v20  ;;  %v1405_v20 = vor.u32 %v1832_v12, %v1402_v14  ;;  %v1474_v56 = vld [vmem:[%s2090_s5 + $0xb4] sm:$0xf0]  ;;  %v1488_v57 = vld [vmem:[%s2090_s5 + $0xa0] sm:$0xf]  ;;  %v1462_v14 = vld [vmem:[%s2090_s5 + $0x84] sm:$0xf0] }
  0x29   : > { %1053 = vmatpush.bf16.msra.mxu2 %v1884_v27  ;;  %v1917_v27 = vld [vmem:[%s2378_s1 + $0x188] sm:$0xff]  ;;  %v1834_v16 = vld [vmem:[%s2090_s5 + $0x14] sm:$0xf] }
  0x2a   : > { %1082 = vmatpush.bf16.msra.mxu3 %v1892_v35  ;;  %v1911_v35 = vld [vmem:[%s2378_s1 + $0x158] sm:$0xff] }
  0x2b   : > { %1006 = vmatmul.bf16.vlgmr.msra.gmra.mxu1 %v1473_v32  ;;  %996 = vmatmul.bf16.vlgmr.msra.gmra.mxu0 %v1401_v33  ;;  %v1912_v32 = vld [vmem:[%s2378_s1 + $0x160] sm:$0xff] }
  0x2c   : > { %1017 = vmatpush.bf16.msrb.mxu1 %v1883_v22  ;;  %1104 = vmatpush.bf16.msrb.mxu0 %v1907_v30  ;;  %v1481_v22 = vor.u32 %v1855_v18, %v1480_v17  ;;  %v1916_v30 = vld [vmem:[%s2378_s1 + $0x180] sm:$0xff]  ;;  %v1418_v17 = vld [vmem:[%s2090_s5 + $0x34] sm:$0xf0] }
  0x2d   : > { %1162 = vmatpush.bf16.msrb.mxu2 %v1923_v31  ;;  %1083 = vmatmul.bf16.vlgmr.msra.gmra.mxu3 %v1413_v42  ;;  %v1926_v31 = vld [vmem:[%s2378_s1 + $0x1d0] sm:$0xff]  ;;  %v1936_v33 = vld [vmem:[%s2378_s1 + $0x220] sm:$0xff] }
  0x2e   : > { %1054 = vmatmul.bf16.vlgmr.msra.gmra.mxu2 %v1409_v34  ;;  %1191 = vmatpush.bf16.msrb.mxu3 %v1931_v39  ;;  %v1925_v34 = vld [vmem:[%s2378_s1 + $0x1c8] sm:$0xff]  ;;  %v1847_v39 = vld [vmem:[%s2090_s5 + $0x78] sm:$0xf0]  ;;  %v1910_v42 = vld [vmem:[%s2378_s1 + $0x150] sm:$0xff] }
  0x2f   : > { %v1432_v18 = vld [vmem:[%s2090_s5 + $0x20] sm:$0xf] }
  0x30   : > { %1018 = vmatpush.bf16.msrb.mxu1 %v1882_v38  ;;  %1105 = vmatpush.bf16.msrb.mxu0 %v1906_v40  ;;  %v1452_v38 = vld [vmem:[%s2090_s5 + $0x58] sm:$0xf]  ;;  %v1516_v40 = vld [vmem:[%s2090_s5 + $0xe0] sm:$0xf] }
  0x31   : > { %1163 = vmatpush.bf16.msrb.mxu2 %v1922_v41  ;;  %v1864_v41 = vld [vmem:[%s2090_s5 + $0x100] sm:$0xf0] }
  0x32   : > { %1192 = vmatpush.bf16.msrb.mxu3 %v1930_v44  ;;  %v1453_v44 = vor.u32 %v1847_v39, %v1452_v38  ;;  %v1534_v38 = vld [vmem:[%s2090_s5 + $0x114] sm:$0xf0] }
  0x34   : > { %1019 = vmatpush.bf16.msrb.mxu1 %v1881_v43  ;;  %1106 = vmatpush.bf16.msrb.mxu0 %v1905_v45  ;;  %v1441_v43 = vor.u32 %v1841_v36, %v1438_v37  ;;  %v1517_v45 = vor.u32 %v1864_v41, %v1516_v40  ;;  %v1862_v37 = vld [vmem:[%s2090_s5 + $0xf4] sm:$0xf]  ;;  %v1852_v40 = vld [vmem:[%s2090_s5 + $0xa4] sm:$0xf]  ;;  %v1490_v41 = vld [vmem:[%s2090_s5 + $0xc4] sm:$0xf0] }
  0x35   : > { %1164 = vmatpush.bf16.msrb.mxu2 %v1921_v46  ;;  %v1860_v46 = vld [vmem:[%s2090_s5 + $0xe4] sm:$0xf]  ;;  %v1537_v39 = vor.u32 %v1862_v37, %v1534_v38 }
  0x36   : > { %1193 = vmatpush.bf16.msrb.mxu3 %v1929_v48 }
  0x38   : > { %1020 = vmatpush.bf16.msrb.mxu1 %v1880_v47  ;;  %1107 = vmatpush.bf16.msrb.mxu0 %v1904_v49  ;;  %v1518_v47 = vld [vmem:[%s2090_s5 + $0x104] sm:$0xf0] }
  0x39   : > { %1165 = vmatpush.bf16.msrb.mxu2 %v1920_v50  ;;  %v1521_v48 = vor.u32 %v1860_v46, %v1518_v47  ;;  %v1909_v49 = vld [vmem:[%s2378_s1 + $0x148] sm:$0xff]  ;;  %v1935_v50 = vld [vmem:[%s2378_s1 + $0x218] sm:$0xff]  ;;  %v1493_v46 = vor.u32 %v1852_v40, %v1490_v41 }
  0x3a   : > { %1194 = vmatpush.bf16.msrb.mxu3 %v1928_v5  ;;  %v1510_v5 = vld [vmem:[%s2090_s5 + $0xfc] sm:$0xf0] }
  0x3b   : > { %1011 = vmatmul.bf16.gmra.mxu1 %v1509_v59  ;;  %1001 = vmatmul.bf16.gmra.mxu0 %v1437_v60  ;;  %v1424_v59 = vld [vmem:[%s2090_s5 + $0x18] sm:$0xf]  ;;  %v1839_v60 = vld [vmem:[%s2090_s5 + $0x38] sm:$0xf0] }
  0x3c   : > { %1021 = vmatpush.bf16.msrb.mxu1 %v1879_v55  ;;  %1108 = vmatpush.bf16.msrb.mxu0 %v1903_v58  ;;  %v1850_v55 = vld [vmem:[%s2090_s5 + $0x94] sm:$0xf]  ;;  %v1856_v58 = vld [vmem:[%s2090_s5 + $0xc0] sm:$0xf0]  ;;  %v1425_v63 = vor.u32 %v1839_v60, %v1424_v59 }
  0x3d   : > { %1166 = vmatpush.bf16.msrb.mxu2 %v1919_v3  ;;  %1088 = vmatmul.bf16.gmra.mxu3 %v1449_v2  ;;  %v1489_v62 = vor.u32 %v1856_v58, %v1488_v57  ;;  %v1932_v3 = vld [vmem:[%s2378_s1 + $0x200] sm:$0xff] }
  0x3e   : > { %1059 = vmatmul.bf16.gmra.mxu2 %v1445_v61  ;;  %1195 = vmatpush.bf16.msrb.mxu3 %v1927_v8  ;;  %v1477_v61 = vor.u32 %v1850_v55, %v1474_v56  ;;  %v1460_v8 = vld [vmem:[%s2090_s5 + $0x60] sm:$0xf]  ;;  %v1861_v55 = vld [vmem:[%s2090_s5 + $0xec] sm:$0xf]  ;;  %v1526_v56 = vld [vmem:[%s2090_s5 + $0x10c] sm:$0xf0] }
  0x3f   : > { %v1529_v57 = vor.u32 %v1861_v55, %v1526_v56 }
  0x40   : > { %1022 = vmatpush.bf16.msrb.mxu1 %v1878_v0  ;;  %1109 = vmatpush.bf16.msrb.mxu0 %v1902_v1  ;;  %v1835_v0 = vld [vmem:[%s2090_s5 + $0x1c] sm:$0xf]  ;;  %v1426_v1 = vld [vmem:[%s2090_s5 + $0x3c] sm:$0xf0] }
  0x41   : > { %1167 = vmatpush.bf16.msrb.mxu2 %v1918_v7  ;;  %v1429_v2 = vor.u32 %v1835_v0, %v1426_v1  ;;  %v1865_v7 = vld [vmem:[%s2090_s5 + $0x108] sm:$0xf0] }
  0x42   : > { %1196 = vmatpush.bf16.msrb.mxu3 %v1926_v31  ;;  %v1849_v31 = vld [vmem:[%s2090_s5 + $0x88] sm:$0xf0] }
  0x44   : > { %1023 = vmatpush.bf16.msrb.mxu1 %v1877_v4  ;;  %1110 = vmatpush.bf16.msrb.mxu0 %v1901_v6  ;;  %v1859_v4 = vld [vmem:[%s2090_s5 + $0xdc] sm:$0xf]  ;;  %v1524_v6 = vld [vmem:[%s2090_s5 + $0xe8] sm:$0xf] }
  0x45   : > { %1168 = vmatpush.bf16.msrb.mxu2 %v1917_v27 }
  0x46   : > { %1197 = vmatpush.bf16.msrb.mxu3 %v1925_v34 }
  0x48   : > { %1024 = vmatpush.bf16.msrb.mxu1 %v1876_v9  ;;  %1111 = vmatpush.bf16.msrb.mxu0 %v1900_v11  ;;  %v1848_v9 = vld [vmem:[%s2090_s5 + $0x80] sm:$0xf0]  ;;  %v1525_v11 = vor.u32 %v1865_v7, %v1524_v6 }
  0x49   : > { %1169 = vmatpush.bf16.msrb.mxu2 %v1916_v30  ;;  %v1461_v12 = vor.u32 %v1848_v9, %v1460_v8  ;;  %v1468_v30 = vld [vmem:[%s2090_s5 + $0x68] sm:$0xf] }
  0x4a   : > { %1198 = vmatpush.bf16.msrb.mxu3 %v1924_v51 }
  0x4b   : > { %1025 = vmatmul.bf16.vlgmr.msrb.gmra.mxu1 %v1405_v20  ;;  %1112 = vmatmul.bf16.vlgmr.msrb.gmra.mxu0 %v1417_v21  ;;  %v1496_v20 = vld [vmem:[%s2090_s5 + $0xa8] sm:$0xf]  ;;  %v1857_v21 = vld [vmem:[%s2090_s5 + $0xc8] sm:$0xf0] }
  0x4c   : > { %1133 = vmatpush.bf16.msra.mxu1 %v1915_v10  ;;  %1220 = vmatpush.bf16.msra.mxu0 %v1939_v13  ;;  %v1513_v10 = vor.u32 %v1859_v4, %v1510_v5  ;;  %v1497_v24 = vor.u32 %v1857_v21, %v1496_v20 }
  0x4d   : > { %1093 = vmatmul.bf16.gmra.mxu3 %v1485_v28  ;;  %1971 = vmatpush.bf16.msra.mxu2 %v1939_v13  ;;  %v1844_v13 = vld [vmem:[%s2090_s5 + $0x64] sm:$0xf]  ;;  %v1843_v28 = vld [vmem:[%s2090_s5 + $0x5c] sm:$0xf] }
  0x4e   : > { %1064 = vmatmul.bf16.gmra.mxu2 %v1481_v22  ;;  %v1465_v15 = vor.u32 %v1844_v13, %v1462_v14  ;;  %v1421_v22 = vor.u32 %v1834_v16, %v1418_v17 }
  0x50   : > { %1134 = vmatpush.bf16.msra.mxu1 %v1914_v19  ;;  %1221 = vmatpush.bf16.msra.mxu0 %v1938_v25  ;;  %v1840_v19 = vld [vmem:[%s2090_s5 + $0x40] sm:$0xf0] }
  0x51   : > { %1972 = vmatpush.bf16.msra.mxu2 %v1938_v25  ;;  %v1433_v23 = vor.u32 %v1840_v19, %v1432_v18  ;;  %v1853_v25 = vld [vmem:[%s2090_s5 + $0xac] sm:$0xf] }
  0x54   : > { %1135 = vmatpush.bf16.msra.mxu1 %v1913_v26  ;;  %1222 = vmatpush.bf16.msra.mxu0 %v1937_v29  ;;  %v1498_v26 = vld [vmem:[%s2090_s5 + $0xcc] sm:$0xf0] }
  0x55   : > { %1973 = vmatpush.bf16.msra.mxu2 %v1937_v29  ;;  %v1501_v27 = vor.u32 %v1853_v25, %v1498_v26  ;;  %v1454_v29 = vld [vmem:[%s2090_s5 + $0x7c] sm:$0xf0] }
  0x56   : > { %v1457_v34 = vor.u32 %v1843_v28, %v1454_v29 }
  0x58   : > { %1136 = vmatpush.bf16.msra.mxu1 %v1912_v32  ;;  %1223 = vmatpush.bf16.msra.mxu0 %v1936_v33  ;;  %v1532_v32 = vld [vmem:[%s2090_s5 + $0xf0] sm:$0xf] }
  0x59   : > { %1974 = vmatpush.bf16.msra.mxu2 %v1936_v33  ;;  %v1866_v33 = vld [vmem:[%s2090_s5 + $0x110] sm:$0xf0] }
  0x5a   : > { %v1533_v36 = vor.u32 %v1866_v33, %v1532_v32 }
  0x5b   : > { %1030 = vmatmul.bf16.gmra.mxu1 %v1441_v43  ;;  %1117 = vmatmul.bf16.gmra.mxu0 %v1453_v44  ;;  %v1858_v43 = vld [vmem:[%s2090_s5 + $0xd0] sm:$0xf0]  ;;  %v1540_v44 = vld [vmem:[%s2090_s5 + $0xf8] sm:$0xf] }
  0x5c   : > { %1137 = vmatpush.bf16.msra.mxu1 %v1911_v35  ;;  %1224 = vmatpush.bf16.msra.mxu0 %v1935_v50  ;;  %v1469_v35 = vor.u32 %v1849_v31, %v1468_v30 }
  0x5d   : > { %1098 = vmatmul.bf16.gmra.mxu3 %v1521_v48  ;;  %1975 = vmatpush.bf16.msra.mxu2 %v1935_v50 }
  0x5e   : > { %1069 = vmatmul.bf16.gmra.mxu2 %v1517_v45  ;;  %v1867_v45 = vld [vmem:[%s2090_s5 + $0x118] sm:$0xf0] }
  0x5f   : > { %v1541_v50 = vor.u32 %v1867_v45, %v1540_v44 }
  0x60   : > { %1138 = vmatpush.bf16.msra.mxu1 %v1910_v42  ;;  %1225 = vmatpush.bf16.msra.mxu0 %v1934_v53  ;;  %v1504_v42 = vld [vmem:[%s2090_s5 + $0xb0] sm:$0xf]  ;;  %s1396_s5 = sshll.u32 %s2382_s30, 2  ;;  %s1397_s30 = sshll.u32 %s2384_s13, 1 }
  0x61   : > { %1976 = vmatpush.bf16.msra.mxu2 %v1934_v53  ;;  %v1505_v47 = vor.u32 %v1858_v43, %v1504_v42  ;;  %s2352_s24 = scalar_lea.vmem %s2379_s2, %s1396_s5  ;;  %s187_s27 = scalar_lea.vmem %s2380_s3, %s1397_s30 }
  0x64   : > { %1139 = vmatpush.bf16.msra.mxu1 %v1909_v49  ;;  %1226 = vmatpush.bf16.msra.mxu0 %v1933_v54 }
  0x65   : > { %1977 = vmatpush.bf16.msra.mxu2 %v1933_v54 }
  0x68   : > { %1140 = vmatpush.bf16.msra.mxu1 %v1908_v52  ;;  %1227 = vmatpush.bf16.msra.mxu0 %v1932_v3 }
  0x69   : > { %1978 = vmatpush.bf16.msra.mxu2 %v1932_v3 }
  0x6b   : > { %1035 = vmatmul.bf16.gmra.mxu1 %v1477_v61  ;;  %1122 = vmatmul.bf16.gmra.mxu0 %v1489_v62 }
  0x6d   : > { %1199 = vmatmul.bf16.vlgmr.msrb.gmra.mxu3 %v1429_v2 }
  0x6e   : > { %1170 = vmatmul.bf16.vlgmr.msrb.gmra.mxu2 %v1425_v63 }
  0x7b   : > { %1040 = vmatmul.bf16.gmra.mxu1 %v1513_v10  ;;  %1127 = vmatmul.bf16.gmra.mxu0 %v1525_v11 }
  0x7d   : > { %1204 = vmatmul.bf16.gmra.mxu3 %v1465_v15 }
  0x7e   : > { %1175 = vmatmul.bf16.gmra.mxu2 %v1461_v12 }
  0x8b   : > { %1141 = vmatmul.bf16.vlgmr.msra.gmra.mxu1 %v1421_v22  ;;  %1228 = vmatmul.bf16.vlgmr.msra.gmra.mxu0 %v1433_v23 }
  0x8d   : > { %1209 = vmatmul.bf16.gmra.mxu3 %v1501_v27 }
  0x8e   : > { %1180 = vmatmul.bf16.gmra.mxu2 %v1497_v24 }
  0x9b   : > { %1146 = vmatmul.bf16.gmra.mxu1 %v1457_v34  ;;  %1233 = vmatmul.bf16.gmra.mxu0 %v1469_v35 }
  0x9d   : > { %1214 = vmatmul.bf16.gmra.mxu3 %v1537_v39 }
  0x9e   : > { %1185 = vmatmul.bf16.gmra.mxu2 %v1533_v36 }
  0xa8   : > { %v1007_v48 = vpop.f32.mrf.mxu1  ;;  %v997_v49 = vpop.f32.mrf.mxu0 }
  0xab   : > { %1151 = vmatmul.bf16.gmra.mxu1 %v1493_v46  ;;  %1238 = vmatmul.bf16.gmra.mxu0 %v1505_v47 }
  0xae   : > { %1243 = vmatmul.bf16.vlgmr.msra.gmra.mxu2 %v1541_v50 }
  0xb0   : > { %v1009_v52 = vpop.f32.mrf.mxu1  ;;  %v999_v53 = vpop.f32.mrf.mxu0 }
  0xb1   : > { %v1055_v51 = vpop.f32.mrf.mxu2  ;;  %v1084_v54 = vpop.f32.mrf.mxu3 }
  0xb8   : > { %v1012_v59 = vpop.f32.mrf.mxu1  ;;  %v1002_v60 = vpop.f32.mrf.mxu0 }
  0xb9   : > { %v1057_v58 = vpop.f32.mrf.mxu2  ;;  %v2323_v61 = vpop.f32.mrf.mxu3 }
  0xbb   : > { %1156 = vmatmul.bf16.gmra.mxu1 %v1529_v57 }
  0xc0   : > { %v1014_v63 = vpop.f32.mrf.mxu1  ;;  %v1004_v0 = vpop.f32.mrf.mxu0 }
  0xc1   : > { %v1060_v62 = vpop.f32.mrf.mxu2  ;;  %v1089_v1 = vpop.f32.mrf.mxu3 }
  0xc8   : > { %v1026_v3 = vpop.f32.mrf.mxu1  ;;  %v1113_v4 = vpop.f32.mrf.mxu0 }
  0xc9   : > { %v1062_v2 = vpop.f32.mrf.mxu2  ;;  %v1027_v5 = vadd.f32 %v1026_v3, %v997_v49  ;;  %v2325_v7 = vpop.f32.mrf.mxu3 }
  0xcb   : > { %v1056_v6 = vadd.f32 %v1055_v51, %v1027_v5 }
  0xcd   : > { %v1085_v8 = vadd.f32 %v1084_v54, %v1056_v6 }
  0xcf   : > { %v1114_v9 = vadd.f32 %v1113_v4, %v1085_v8 }
  0xd0   : > { %v1028_v11 = vpop.f32.mrf.mxu1  ;;  %v1115_v12 = vpop.f32.mrf.mxu0 }
  0xd1   : > { %v1065_v10 = vpop.f32.mrf.mxu2  ;;  %v1029_v13 = vadd.f32 %v1028_v11, %v999_v53  ;;  %v1094_v15 = vpop.f32.mrf.mxu3 }
  0xd3   : > { %v1058_v14 = vadd.f32 %v1057_v58, %v1029_v13 }
  0xd8   : > { %v1031_v17 = vpop.f32.mrf.mxu1  ;;  %v1118_v18 = vpop.f32.mrf.mxu0 }
  0xd9   : > { %v1067_v16 = vpop.f32.mrf.mxu2  ;;  %v1032_v19 = vadd.f32 %v1031_v17, %v1002_v60  ;;  %v2327_v24 = vpop.f32.mrf.mxu3  ;;  %v1087_v60 = vadd.f32 %v2323_v61, %v1058_v14 }
  0xdb   : > { %v1061_v20 = vadd.f32 %v1060_v62, %v1032_v19 }
  0xdd   : > { %v1090_v21 = vadd.f32 %v1089_v1, %v1061_v20 }
  0xdf   : > { %v1119_v22 = vadd.f32 %v1118_v18, %v1090_v21 }
  0xe0   : > { %v1033_v25 = vpop.f32.mrf.mxu1  ;;  %v1120_v26 = vpop.f32.mrf.mxu0 }
  0xe1   : > { %v1070_v23 = vpop.f32.mrf.mxu2  ;;  %v1034_v27 = vadd.f32 %v1033_v25, %v1004_v0  ;;  %v2329_v33 = vpop.f32.mrf.mxu3 }
  0xe3   : > { %v1063_v28 = vadd.f32 %v1062_v2, %v1034_v27 }
  0xe8   : > { %v1036_v30 = vpop.f32.mrf.mxu1  ;;  %v1123_v31 = vpop.f32.mrf.mxu0 }
  0xe9   : > { %v1072_v29 = vpop.f32.mrf.mxu2  ;;  %v1037_v32 = vadd.f32 %v1036_v30, %v1007_v48  ;;  %v2337_v42 = vpop.f32.mrf.mxu3 }
  0xeb   : > { %v1066_v34 = vadd.f32 %v1065_v10, %v1037_v32 }
  0xed   : > { %v1095_v35 = vadd.f32 %v1094_v15, %v1066_v34 }
  0xef   : > { %v2331_v36 = vadd.f32 %v1123_v31, %v1095_v35 }
  0xf0   : > { %v1038_v38 = vpop.f32.mrf.mxu1  ;;  %v2333_v39 = vpop.f32.mrf.mxu0 }
  0xf1   : > { %v1171_v37 = vpop.f32.mrf.mxu2  ;;  %v1039_v40 = vadd.f32 %v1038_v38, %v1009_v52  ;;  %v1200_v48 = vpop.f32.mrf.mxu3 }
  0xf3   : > { %v2335_v41 = vadd.f32 %v1067_v16, %v1039_v40  ;;  %v1092_v16 = vadd.f32 %v2325_v7, %v1063_v28 }
  0xf8   : > { %v1041_v44 = vpop.f32.mrf.mxu1  ;;  %v2339_v45 = vpop.f32.mrf.mxu0 }
  0xf9   : > { %v1173_v43 = vpop.f32.mrf.mxu2  ;;  %v1042_v46 = vadd.f32 %v1041_v44, %v1012_v59  ;;  %v1202_v52 = vpop.f32.mrf.mxu3  ;;  %v1116_v59 = vadd.f32 %v1115_v12, %v1087_v60 }
  0xfb   : > { %v2341_v47 = vadd.f32 %v1070_v23, %v1042_v46  ;;  %v1121_v23 = vadd.f32 %v1120_v26, %v1092_v16 }
 0x100   : > { %v1043_v50 = vpop.f32.mrf.mxu1  ;;  %v2343_v51 = vpop.f32.mrf.mxu0 }
 0x101   : > { %v1176_v49 = vpop.f32.mrf.mxu2  ;;  %v1044_v53 = vadd.f32 %v1043_v50, %v1014_v63  ;;  %v1205_v4 = vpop.f32.mrf.mxu3 }
 0x103   : > { %v2345_v54 = vadd.f32 %v1072_v29, %v1044_v53 }
 0x108   : > { %v1142_v55 = vpop.f32.mrf.mxu1  ;;  %v1229_v56 = vpop.f32.mrf.mxu0 }
 0x109   : > { %v1143_v57 = vadd.f32 %v1142_v55, %v1114_v9  ;;  %v1178_v58 = vpop.f32.mrf.mxu2  ;;  %v1207_v19 = vpop.f32.mrf.mxu3 }
 0x10b   : > { %v1172_v62 = vadd.f32 %v1171_v37, %v1143_v57 }
 0x10d   : > { %v1201_v0 = vadd.f32 %v1200_v48, %v1172_v62  ;;  %v1097_v48 = vadd.f32 %v2327_v24, %v2335_v41 }
 0x10f   : > { %v1230_v6 = vadd.f32 %v1229_v56, %v1201_v0 }
 0x110   : > { %v1144_v1 = vpop.f32.mrf.mxu1  ;;  %v1231_v2 = vpop.f32.mrf.mxu0 }
 0x111   : > { %v1145_v3 = vadd.f32 %v1144_v1, %v1116_v59  ;;  %v1181_v63 = vpop.f32.mrf.mxu2  ;;  %v1279_v11 = vmul.f32 %v1230_v6, %v1230_v6 }
 0x113   : > { %v1174_v5 = vadd.f32 %v1173_v43, %v1145_v3 }
 0x115   : > { %v1203_v8 = vadd.f32 %v1202_v52, %v1174_v5  ;;  %v1126_v52 = vadd.f32 %v2333_v39, %v1097_v48 }
 0x117   : > { %v1232_v10 = vadd.f32 %v1231_v2, %v1203_v8 }
 0x118   : > { %v1147_v61 = vpop.f32.mrf.mxu1  ;;  %v1234_v9 = vpop.f32.mrf.mxu0 }
 0x119   : > { %v1943_v12 = vpack.c.bf16 %v1232_v10, %v1230_v6  ;;  %v1265_v13 = vadd.f32 %v1232_v10, %v1230_v6  ;;  %v1280_v14 = vmul.f32 %v1232_v10, %v1232_v10  ;;  %v1148_v15 = vadd.f32 %v1147_v61, %v1119_v22  ;;  %v1183_v21 = vpop.f32.mrf.mxu2  ;;  %v1210_v22 = vpop.f32.mrf.mxu3 }
 0x11a   : > { %v1102_v10 = vadd.f32 %v2337_v42, %v2345_v54 }
 0x11b   : > { %1944 = vst [vmem:[%s2352_s24] sm:$0xff] %v1943_v12   ;;  %v1287_v17 = vadd.f32 %v1280_v14, %v1279_v11  ;;  %v1177_v18 = vadd.f32 %v1176_v49, %v1148_v15 }
 0x11d   : > { %v1206_v20 = vadd.f32 %v1205_v4, %v1177_v18 }
 0x11f   : > { %v1235_v25 = vadd.f32 %v1234_v9, %v1206_v20  ;;  %v1131_v9 = vadd.f32 %v2343_v51, %v1102_v10 }
 0x120   : > { %v1149_v27 = vpop.f32.mrf.mxu1  ;;  %v1236_v29 = vpop.f32.mrf.mxu0 }
 0x121   : > { %v1266_v30 = vadd.f32 %v1265_v13, %v1235_v25  ;;  %v1281_v31 = vmul.f32 %v1235_v25, %v1235_v25  ;;  %v1150_v32 = vadd.f32 %v1149_v27, %v1121_v23  ;;  %v1186_v7 = vpop.f32.mrf.mxu2  ;;  %v1212_v56 = vpop.f32.mrf.mxu3 }
 0x123   : > { %v1288_v34 = vadd.f32 %v1287_v17, %v1281_v31  ;;  %v1179_v35 = vadd.f32 %v1178_v58, %v1150_v32 }
 0x125   : > { %v1208_v37 = vadd.f32 %v1207_v19, %v1179_v35 }
 0x127   : > { %v1237_v38 = vadd.f32 %v1236_v29, %v1208_v37 }
 0x128   : > { %v1152_v28 = vpop.f32.mrf.mxu1  ;;  %v1239_v26 = vpop.f32.mrf.mxu0 }
 0x129   : > { %v1948_v40 = vpack.c.bf16 %v1237_v38, %v1235_v25  ;;  %v1267_v43 = vadd.f32 %v1266_v30, %v1237_v38  ;;  %v1282_v44 = vmul.f32 %v1237_v38, %v1237_v38  ;;  %v1153_v46 = vadd.f32 %v1152_v28, %v2331_v36  ;;  %v1188_v59 = vpop.f32.mrf.mxu2  ;;  %v1215_v8 = vpop.f32.mrf.mxu3 }
 0x12a   : > { %v1100_v36 = vadd.f32 %v2329_v33, %v2341_v47 }
 0x12b   : > { %1960 = vst [vmem:[%s2352_s24 + $0x8] sm:$0xff] %v1948_v40   ;;  %v1289_v49 = vadd.f32 %v1288_v34, %v1282_v44  ;;  %v1182_v50 = vadd.f32 %v1181_v63, %v1153_v46 }
 0x12c   : > { %v1129_v2 = vadd.f32 %v2339_v45, %v1100_v36 }
 0x12d   : > { %v1211_v53 = vadd.f32 %v1210_v22, %v1182_v50 }
 0x12f   : > { %v1240_v55 = vadd.f32 %v1239_v26, %v1211_v53 }
 0x130   : > { %v1154_v57 = vpop.f32.mrf.mxu1  ;;  %v1241_v24 = vpop.f32.mrf.mxu0 }
 0x131   : > { %v1268_v58 = vadd.f32 %v1267_v43, %v1240_v55  ;;  %v1283_v60 = vmul.f32 %v1240_v55, %v1240_v55  ;;  %v1155_v62 = vadd.f32 %v1154_v57, %v1126_v52  ;;  %v1244_v47 = vpop.f32.mrf.mxu2  ;;  %v1217_v18 = vpop.f32.mrf.mxu3 }
 0x133   : > { %v1290_v0 = vadd.f32 %v1289_v49, %v1283_v60  ;;  %v1184_v1 = vadd.f32 %v1183_v21, %v1155_v62 }
 0x135   : > { %v1213_v41 = vadd.f32 %v1212_v56, %v1184_v1 }
 0x137   : > { %v1242_v3 = vadd.f32 %v1241_v24, %v1213_v41 }
 0x138   : > { %v1157_v4 = vpop.f32.mrf.mxu1 }
 0x139   : > { %v1953_v39 = vpack.c.bf16 %v1242_v3, %v1240_v55  ;;  %v1269_v5 = vadd.f32 %v1268_v58, %v1242_v3  ;;  %v1284_v6 = vmul.f32 %v1242_v3, %v1242_v3  ;;  %v1158_v63 = vadd.f32 %v1157_v4, %v1129_v2  ;;  %v1246_v42 = vpop.f32.mrf.mxu2 }
 0x13b   : > { %1961 = vst [vmem:[%s2352_s24 + $0x10] sm:$0xff] %v1953_v39   ;;  %v1291_v11 = vadd.f32 %v1290_v0, %v1284_v6  ;;  %v1187_v33 = vadd.f32 %v1186_v7, %v1158_v63 }
 0x13d   : > { %v1216_v61 = vadd.f32 %v1215_v8, %v1187_v33 }
 0x13f   : > { %v1245_v45 = vadd.f32 %v1244_v47, %v1216_v61 }
 0x140   : > { %v1159_v12 = vpop.f32.mrf.mxu1 }
 0x141   : > { %v1270_v13 = vadd.f32 %v1269_v5, %v1245_v45  ;;  %v1285_v14 = vmul.f32 %v1245_v45, %v1245_v45  ;;  %v1160_v15 = vadd.f32 %v1159_v12, %v1131_v9 }
 0x143   : > { %v1292_v16 = vadd.f32 %v1291_v11, %v1285_v14  ;;  %v1189_v17 = vadd.f32 %v1188_v59, %v1160_v15 }
 0x145   : > { %v1218_v19 = vadd.f32 %v1217_v18, %v1189_v17 }
 0x147   : > { %v1247_v54 = vadd.f32 %v1246_v42, %v1218_v19 }
 0x149   : > { %v1958_v20 = vpack.c.bf16 %v1247_v54, %v1245_v45  ;;  %v1271_v21 = vadd.f32 %v1270_v13, %v1247_v54  ;;  %v1286_v23 = vmul.f32 %v1247_v54, %v1247_v54 }
 0x14b   : > { %1962 = vst [vmem:[%s2352_s24 + $0x18] sm:$0xff] %v1958_v20   ;;  %v1272_v25 = vrot.slane %v1271_v21, 4  ;;  %v1293_v51 = vadd.f32 %v1292_v16, %v1286_v23 }
 0x14d   : > { %v1273_v27 = vadd.f32 %v1272_v25, %v1271_v21  ;;  %v1294_v29 = vrot.slane %v1293_v51, 4 }
 0x14f   : > { %v1274_v30 = vrot.slane %v1273_v27, 2  ;;  %v1295_v31 = vadd.f32 %v1294_v29, %v1293_v51 }
 0x151   : > { %v1275_v32 = vadd.f32 %v1274_v30, %v1273_v27  ;;  %v1296_v34 = vrot.slane %v1295_v31, 2 }
 0x153   : > { %v1276_v35 = vrot.slane %v1275_v32, 1  ;;  %v1297_v37 = vadd.f32 %v1296_v34, %v1295_v31 }
 0x155   : > { %v1277_v22 = vadd.f32 %v1276_v35, %v1275_v32  ;;  %v1298_v38 = vrot.slane %v1297_v37, 1 }
 0x157   : > { %1278 = vst [vmem:[%s187_s27] sm:$0x1] %v1277_v22  ;;  %v1299_v7 = vadd.f32 %v1298_v38, %v1297_v37 }
 0x159   : > { %1300 = vst [vmem:[%s187_s27 + $0x1] sm:$0x1] %v1299_v7 }
 0x15a PF: > { %s14_s12 = sadd.s32 1, %s1994_s12  }
 0x15b   : > { %p11_p5 = scmp.ge.s32.totalorder %s14_s12, 4  }
 0x15d   :  { %13 = sbr.rel (!%p11_p5) target bundleno = 1 (0x1), region = 70 }

// kernel: bottleneck_forward.9
= control target key start
LH: loop header
LB: loop body
LE: loop exit
PB: predicated region body
PF: predicated region fallthrough
CT: control target
= control target key end

     0   :  { %s586_s21 = smov 0   ;;  %s681_s0 = inlined_call_operand.vmem [shape: bf16[128,128], index: 0, kind: input, shape index: {}]   ;;  %s682_s1 = inlined_call_operand.vmem [shape: f32[1,128], index: 1, kind: input, shape index: {}]   ;;  %s683_s2 = inlined_call_operand.vmem [shape: f32[1,128], index: 2, kind: input, shape index: {}]   ;;  %s684_s3 = inlined_call_operand.vmem [shape: bf16[128,128], index: 3, kind: input, shape index: {}]   ;;  %s685_s4 = inlined_call_operand.vmem [shape: f32[1,128], index: 4, kind: input, shape index: {}]   ;;  %s686_s5 = inlined_call_operand.vmem [shape: f32[1,128], index: 5, kind: input, shape index: {}]   ;;  %s687_s6 = inlined_call_operand.vmem [shape: bf16[128,128], index: 6, kind: output, shape index: {}]  }
   0x1 LB: > { %s457_s22 = sadd.s32 4294967295, %s549_s21   ;;  %p461_p0 = scmp.ge.s32.totalorder %s549_s21, 1  ;;  %s549_s21 = sphi %s586_s21, %s16_s21  }
   0x2   : > { %p224_p1 = scmp.lt.s32.totalorder %s549_s21, 3 }
   0x4   : > { %p225_p2 = pnand %p461_p0, %p224_p1 }
   0x5   : > { %s462_s23 = sshll.u32 (!%p225_p2), %s457_s22, 3 }
   0x6   : > { %228 = sbr.rel (%p225_p2) target bundleno = 40 (0x28), region = 44  ;;  %p260_p3 = scmp.lt.s32.totalorder (!%p225_p2), %s462_s23, 15 }
   0xb   : > { %s689_s23 = smov (!%p260_p3, %s462_s23), 15  ;;  %v611_v0 = vld [vmem:[%s682_s1] ss:$0 sm:$0xff] }
   0xc   : > { %s594_s24 = sshll.u32 %s689_s23, 2  ;;  %v616_v1 = vld [vmem:[%s685_s4] ss:$0 sm:$0xff] }
   0xd   : > { %s600_s27 = scalar_lea.vmem %s681_s0, %s594_s24  ;;  %s606_s30 = scalar_lea.vmem %s684_s3, %s594_s24  ;;  %v624_v7 = vld [vmem:[%s683_s2] ss:$0 sm:$0xff] }
   0xe   : > { %v471_v2 = vld [vmem:[%s600_s27] sm:$0xff]   ;;  %v522_v4 = vld [vmem:[%s600_s27 + $0x8] sm:$0xff]   ;;  %v523_v24 = vld [vmem:[%s600_s27 + $0x10] sm:$0xff]   ;;  %s657_s17 = scalar_lea.vmem %s687_s6, %s594_s24 }
   0xf   : > { %v487_v3 = vld [vmem:[%s606_s30] sm:$0xff]   ;;  %v472_v5 = vunpack.c.l.bf16 %v471_v2  ;;  %v473_v6 = vunpack.c.h.bf16 %v471_v2  ;;  %v525_v11 = vld [vmem:[%s606_s30 + $0x8] sm:$0xff]   ;;  %v476_v12 = vunpack.c.l.bf16 %v522_v4  ;;  %v477_v13 = vunpack.c.h.bf16 %v522_v4  ;;  %v526_v29 = vld [vmem:[%s606_s30 + $0x10] sm:$0xff]  }
  0x10   : > { %v488_v8 = vunpack.c.l.bf16 %v487_v3  ;;  %v489_v9 = vunpack.c.h.bf16 %v487_v3  ;;  %v629_v10 = vld [vmem:[%s686_s5] ss:$0 sm:$0xff]  ;;  %v492_v14 = vunpack.c.l.bf16 %v525_v11  ;;  %v493_v15 = vunpack.c.h.bf16 %v525_v11  ;;  %v524_v42 = vld [vmem:[%s600_s27 + $0x18] sm:$0xff]  }
  0x11   : > { %v297_v16 = vmul.f32 %v611_v0, %v472_v5  ;;  %v298_v17 = vmul.f32 %v611_v0, %v473_v6  ;;  %v299_v20 = vmul.f32 %v611_v0, %v476_v12  ;;  %v300_v21 = vmul.f32 %v611_v0, %v477_v13  ;;  %v527_v51 = vld [vmem:[%s606_s30 + $0x18] sm:$0xff]  }
  0x12   : > { %v337_v18 = vmul.f32 %v616_v1, %v488_v8  ;;  %v338_v19 = vmul.f32 %v616_v1, %v489_v9  ;;  %v339_v22 = vmul.f32 %v616_v1, %v492_v14  ;;  %v340_v23 = vmul.f32 %v616_v1, %v493_v15 }
  0x13   : > { %v309_v25 = vadd.f32 %v624_v7, %v297_v16  ;;  %v310_v26 = vadd.f32 %v624_v7, %v298_v17  ;;  %v311_v30 = vadd.f32 %v624_v7, %v299_v20  ;;  %v312_v31 = vadd.f32 %v624_v7, %v300_v21 }
  0x14   : > { %v349_v27 = vadd.f32 %v629_v10, %v337_v18  ;;  %v350_v28 = vadd.f32 %v629_v10, %v338_v19  ;;  %v351_v32 = vadd.f32 %v629_v10, %v339_v22  ;;  %v352_v33 = vadd.f32 %v629_v10, %v340_v23 }
  0x15   : > { %v480_v36 = vunpack.c.l.bf16 %v523_v24  ;;  %v481_v37 = vunpack.c.h.bf16 %v523_v24  ;;  %v496_v40 = vunpack.c.l.bf16 %v526_v29  ;;  %v497_v41 = vunpack.c.h.bf16 %v526_v29 }
  0x16   : > { %v357_v34 = vadd.f32 %v349_v27, %v309_v25  ;;  %v358_v35 = vadd.f32 %v350_v28, %v310_v26  ;;  %v359_v38 = vadd.f32 %v351_v32, %v311_v30  ;;  %v360_v39 = vadd.f32 %v352_v33, %v312_v31 }
  0x17   : > { %v301_v45 = vmul.f32 %v611_v0, %v480_v36  ;;  %v302_v46 = vmul.f32 %v611_v0, %v481_v37  ;;  %v341_v49 = vmul.f32 %v616_v1, %v496_v40  ;;  %v342_v50 = vmul.f32 %v616_v1, %v497_v41 }
  0x18   : > { %v365_v43 = vmax.f32 %v357_v34, 0.0  ;;  %v366_v44 = vmax.f32 %v358_v35, 0.0  ;;  %v367_v47 = vmax.f32 %v359_v38, 0.0  ;;  %v368_v48 = vmax.f32 %v360_v39, 0.0 }
  0x19   : > { %v313_v53 = vadd.f32 %v624_v7, %v301_v45  ;;  %v314_v54 = vadd.f32 %v624_v7, %v302_v46  ;;  %v484_v55 = vunpack.c.l.bf16 %v524_v42  ;;  %v353_v57 = vadd.f32 %v629_v10, %v341_v49 }
  0x1a   : > { %v505_v52 = vpack.c.bf16 %v366_v44, %v365_v43  ;;  %v510_v56 = vpack.c.bf16 %v368_v48, %v367_v47  ;;  %v354_v58 = vadd.f32 %v629_v10, %v342_v50  ;;  %v485_v59 = vunpack.c.h.bf16 %v524_v42 }
  0x1b   : > { %v303_v60 = vmul.f32 %v611_v0, %v484_v55  ;;  %v500_v61 = vunpack.c.l.bf16 %v527_v51  ;;  %v501_v62 = vunpack.c.h.bf16 %v527_v51  ;;  %v361_v63 = vadd.f32 %v353_v57, %v313_v53 }
  0x1c   : > { %506 = vst [vmem:[%s657_s17] sm:$0xff] %v505_v52   ;;  %v362_v2 = vadd.f32 %v354_v58, %v314_v54  ;;  %v304_v3 = vmul.f32 %v611_v0, %v485_v59 }
  0x1d   : > { %528 = vst [vmem:[%s657_s17 + $0x8] sm:$0xff] %v510_v56   ;;  %v315_v4 = vadd.f32 %v624_v7, %v303_v60  ;;  %v343_v5 = vmul.f32 %v616_v1, %v500_v61  ;;  %v344_v6 = vmul.f32 %v616_v1, %v501_v62  ;;  %v369_v8 = vmax.f32 %v361_v63, 0.0 }
  0x1e   : > { %v370_v9 = vmax.f32 %v362_v2, 0.0  ;;  %v316_v11 = vadd.f32 %v624_v7, %v304_v3 }
  0x1f   : > { %v355_v12 = vadd.f32 %v629_v10, %v343_v5  ;;  %v356_v13 = vadd.f32 %v629_v10, %v344_v6 }
  0x20   : > { %v515_v14 = vpack.c.bf16 %v370_v9, %v369_v8 }
  0x21   : > { %v363_v15 = vadd.f32 %v355_v12, %v315_v4  ;;  %v364_v16 = vadd.f32 %v356_v13, %v316_v11 }
  0x22   : > { %529 = vst [vmem:[%s657_s17 + $0x10] sm:$0xff] %v515_v14  }
  0x23   : > { %v371_v0 = vmax.f32 %v363_v15, 0.0  ;;  %v372_v17 = vmax.f32 %v364_v16, 0.0 }
  0x25   : > { %v520_v18 = vpack.c.bf16 %v372_v17, %v371_v0 }
  0x27   : > { %530 = vst [vmem:[%s657_s17 + $0x18] sm:$0xff] %v520_v18  }
  0x28 PF: > { %s16_s21 = sadd.s32 1, %s549_s21  }
  0x29   : > { %p13_p4 = scmp.ge.s32.totalorder %s16_s21, 4  }
  0x2b   :  { %15 = sbr.rel (!%p13_p4) target bundleno = 1 (0x1), region = 77 }

// kernel: bottleneck_forward.8
= control target key start
LH: loop header
LB: loop body
LE: loop exit
PB: predicated region body
PF: predicated region fallthrough
CT: control target
= control target key end

     0   :  { %s604_s12 = smov 0   ;;  %s656_s0 = inlined_call_operand.vmem [shape: bf16[128,128], index: 0, kind: input, shape index: {}]   ;;  %s657_s1 = inlined_call_operand.vmem [shape: bf16[128,128], index: 1, kind: input, shape index: {}]   ;;  %s658_s2 = inlined_call_operand.vmem [shape: bf16[128,128], index: 2, kind: output, shape index: {0}]   ;;  %s659_s3 = inlined_call_operand.vmem [shape: f32[2,2,128], index: 3, kind: output, shape index: {1}]  }
   0x1 LB: > { %s610_s13 = sadd.s32 4294967295, %s582_s12   ;;  %p453_p0 = scmp.ge.s32.totalorder %s582_s12, 1  ;;  %s582_s12 = sphi %s604_s12, %s14_s12  }
   0x2   : > { %p141_p1 = scmp.lt.s32.totalorder %s582_s12, 3 }
   0x4   : > { %p142_p2 = pnand %p453_p0, %p141_p1 }
   0x5   : > { %s454_s22 = sshll.u32 (!%p142_p2), %s610_s13, 3  ;;  %p181_p4 = scmp.lt.s32.totalorder (!%p142_p2), %s610_s13, 1 }
   0x6   : > { %145 = sbr.rel (%p142_p2) target bundleno = 206 (0xce), region = 28  ;;  %p170_p3 = scmp.lt.s32.totalorder (!%p142_p2), %s454_s22, 15 }
   0xb   : > { %v520_v0 = vld [vmem:[%s657_s1 + $0x38] sm:$0xff]  ;;  %v519_v1 = vld [vmem:[%s657_s1 + $0x30] sm:$0xff]  ;;  %v518_v2 = vld [vmem:[%s657_s1 + $0x28] sm:$0xff]  ;;  %s661_s22 = smov (!%p170_p3, %s454_s22), 15  ;;  %s663_s13 = smov (!%p181_p4, %s610_s13), 1 }
   0xc   : > { %281 = vmatpush.bf16.msra.mxu0 %v520_v0  ;;  %544 = vmatpush.bf16.msra.mxu1 %v520_v0  ;;  %v517_v3 = vld [vmem:[%s657_s1 + $0x20] sm:$0xff]  ;;  %v516_v4 = vld [vmem:[%s657_s1 + $0x18] sm:$0xff]  ;;  %v515_v5 = vld [vmem:[%s657_s1 + $0x10] sm:$0xff]  ;;  %s455_s29 = sshll.u32 %s661_s22, 2  ;;  %s458_s11 = sshll.u32 %s663_s13, 1 }
   0xd   : > { %545 = vmatpush.bf16.msra.mxu2 %v520_v0  ;;  %546 = vmatpush.bf16.msra.mxu3 %v520_v0  ;;  %v514_v6 = vld [vmem:[%s657_s1 + $0x8] sm:$0xff]  ;;  %v513_v7 = vld [vmem:[%s657_s1] sm:$0xff]  ;;  %s173_s7 = scalar_lea.vmem %s656_s0, %s455_s29  ;;  %s179_s10 = scalar_lea.vmem %s658_s2, %s455_s29 }
   0xe   : > { %v509_v8 = vld [vmem:[%s173_s7] sm:$0xff]  ;;  %v510_v9 = vld [vmem:[%s173_s7 + $0x8] sm:$0xff]  ;;  %v511_v10 = vld [vmem:[%s173_s7 + $0x10] sm:$0xff]  ;;  %s184_s16 = scalar_lea.vmem %s659_s3, %s458_s11 }
   0xf   : > { %v512_v11 = vld [vmem:[%s173_s7 + $0x18] sm:$0xff] }
  0x10   : > { %282 = vmatpush.bf16.msra.mxu0 %v519_v1  ;;  %547 = vmatpush.bf16.msra.mxu1 %v519_v1 }
  0x11   : > { %548 = vmatpush.bf16.msra.mxu2 %v519_v1  ;;  %549 = vmatpush.bf16.msra.mxu3 %v519_v1 }
  0x14   : > { %283 = vmatpush.bf16.msra.mxu0 %v518_v2  ;;  %550 = vmatpush.bf16.msra.mxu1 %v518_v2 }
  0x15   : > { %551 = vmatpush.bf16.msra.mxu2 %v518_v2  ;;  %552 = vmatpush.bf16.msra.mxu3 %v518_v2 }
  0x18   : > { %284 = vmatpush.bf16.msra.mxu0 %v517_v3  ;;  %553 = vmatpush.bf16.msra.mxu1 %v517_v3 }
  0x19   : > { %554 = vmatpush.bf16.msra.mxu2 %v517_v3  ;;  %555 = vmatpush.bf16.msra.mxu3 %v517_v3 }
  0x1c   : > { %285 = vmatpush.bf16.msra.mxu0 %v516_v4  ;;  %556 = vmatpush.bf16.msra.mxu1 %v516_v4 }
  0x1d   : > { %557 = vmatpush.bf16.msra.mxu2 %v516_v4  ;;  %558 = vmatpush.bf16.msra.mxu3 %v516_v4 }
  0x20   : > { %286 = vmatpush.bf16.msra.mxu0 %v515_v5  ;;  %559 = vmatpush.bf16.msra.mxu1 %v515_v5 }
  0x21   : > { %560 = vmatpush.bf16.msra.mxu2 %v515_v5  ;;  %561 = vmatpush.bf16.msra.mxu3 %v515_v5 }
  0x24   : > { %287 = vmatpush.bf16.msra.mxu0 %v514_v6  ;;  %562 = vmatpush.bf16.msra.mxu1 %v514_v6 }
  0x25   : > { %563 = vmatpush.bf16.msra.mxu2 %v514_v6  ;;  %564 = vmatpush.bf16.msra.mxu3 %v514_v6 }
  0x28   : > { %288 = vmatpush.bf16.msra.mxu0 %v513_v7  ;;  %565 = vmatpush.bf16.msra.mxu1 %v513_v7 }
  0x29   : > { %566 = vmatpush.bf16.msra.mxu2 %v513_v7  ;;  %567 = vmatpush.bf16.msra.mxu3 %v513_v7 }
  0x2b   : > { %289 = vmatmul.bf16.vlgmr.msra.gmra.mxu0 %v509_v8  ;;  %294 = vmatmul.bf16.vlgmr.msra.gmra.mxu1 %v510_v9 }
  0x2c   : > { %299 = vmatmul.bf16.vlgmr.msra.gmra.mxu2 %v511_v10  ;;  %304 = vmatmul.bf16.vlgmr.msra.gmra.mxu3 %v512_v11 }
  0xa8   : > { %v290_v12 = vpop.f32.mrf.mxu0  ;;  %v295_v13 = vpop.f32.mrf.mxu1 }
  0xa9   : > { %v340_v16 = vmul.f32 %v290_v12, %v290_v12  ;;  %v342_v23 = vmul.f32 %v295_v13, %v295_v13 }
  0xaf   : > { %v300_v14 = vpop.f32.mrf.mxu2  ;;  %v305_v15 = vpop.f32.mrf.mxu3 }
  0xb0   : > { %v292_v17 = vpop.f32.mrf.mxu0  ;;  %v297_v18 = vpop.f32.mrf.mxu1  ;;  %v344_v29 = vmul.f32 %v300_v14, %v300_v14  ;;  %v346_v39 = vmul.f32 %v305_v15, %v305_v15 }
  0xb1   : > { %v524_v19 = vpack.c.bf16 %v292_v17, %v290_v12  ;;  %v326_v20 = vadd.f32 %v292_v17, %v290_v12  ;;  %v341_v21 = vmul.f32 %v292_v17, %v292_v17  ;;  %v529_v22 = vpack.c.bf16 %v297_v18, %v295_v13 }
  0xb2   : > { %v343_v27 = vmul.f32 %v297_v18, %v297_v18 }
  0xb3   : > { %525 = vst [vmem:[%s179_s10] sm:$0xff] %v524_v19   ;;  %v348_v24 = vadd.f32 %v341_v21, %v340_v16  ;;  %v327_v25 = vadd.f32 %v326_v20, %v295_v13 }
  0xb4   : > { %541 = vst [vmem:[%s179_s10 + $0x8] sm:$0xff] %v529_v22  }
  0xb5   : > { %v328_v26 = vadd.f32 %v327_v25, %v297_v18  ;;  %v349_v28 = vadd.f32 %v348_v24, %v342_v23 }
  0xb7   : > { %v350_v30 = vadd.f32 %v349_v28, %v343_v27  ;;  %v302_v31 = vpop.f32.mrf.mxu2  ;;  %v329_v32 = vadd.f32 %v328_v26, %v300_v14  ;;  %v307_v33 = vpop.f32.mrf.mxu3 }
  0xb8   : > { %v534_v34 = vpack.c.bf16 %v302_v31, %v300_v14  ;;  %v539_v35 = vpack.c.bf16 %v307_v33, %v305_v15  ;;  %v345_v37 = vmul.f32 %v302_v31, %v302_v31  ;;  %v347_v43 = vmul.f32 %v307_v33, %v307_v33 }
  0xb9   : > { %v330_v36 = vadd.f32 %v329_v32, %v302_v31  ;;  %v351_v38 = vadd.f32 %v350_v30, %v344_v29 }
  0xba   : > { %542 = vst [vmem:[%s179_s10 + $0x10] sm:$0xff] %v534_v34  }
  0xbb   : > { %v352_v40 = vadd.f32 %v351_v38, %v345_v37  ;;  %543 = vst [vmem:[%s179_s10 + $0x18] sm:$0xff] %v539_v35   ;;  %v331_v41 = vadd.f32 %v330_v36, %v305_v15 }
  0xbd   : > { %v332_v42 = vadd.f32 %v331_v41, %v307_v33  ;;  %v353_v44 = vadd.f32 %v352_v40, %v346_v39 }
  0xbf   : > { %v333_v45 = vrot.slane %v332_v42, 4  ;;  %v354_v46 = vadd.f32 %v353_v44, %v347_v43 }
  0xc1   : > { %v334_v47 = vadd.f32 %v333_v45, %v332_v42  ;;  %v355_v48 = vrot.slane %v354_v46, 4 }
  0xc3   : > { %v335_v49 = vrot.slane %v334_v47, 2  ;;  %v356_v50 = vadd.f32 %v355_v48, %v354_v46 }
  0xc5   : > { %v336_v51 = vadd.f32 %v335_v49, %v334_v47  ;;  %v357_v52 = vrot.slane %v356_v50, 2 }
  0xc7   : > { %v337_v53 = vrot.slane %v336_v51, 1  ;;  %v358_v54 = vadd.f32 %v357_v52, %v356_v50 }
  0xc9   : > { %v338_v55 = vadd.f32 %v337_v53, %v336_v51  ;;  %v359_v56 = vrot.slane %v358_v54, 1 }
  0xcb   : > { %339 = vst [vmem:[%s184_s16] sm:$0x1] %v338_v55  ;;  %v360_v57 = vadd.f32 %v359_v56, %v358_v54 }
  0xcd   : > { %361 = vst [vmem:[%s184_s16 + $0x1] sm:$0x1] %v360_v57 }
  0xce PF: > { %s14_s12 = sadd.s32 1, %s582_s12  }
  0xcf   : > { %p11_p5 = scmp.ge.s32.totalorder %s14_s12, 4  }
  0xd1   :  { %13 = sbr.rel (!%p11_p5) target bundleno = 1 (0x1), region = 70 }

</bundles_post_ra>
